<compile_context>
chip_gen: v6e
topology: v6e:2x2x1
jax: 0.10.0
libtpu: 0.0.40
codegen_flags: <defaults>
</compile_context>

<pallas_src>
import jax
import jax.numpy as jnp
from jax.experimental import pallas as pl
from jax.experimental.pallas import tpu as pltpu

# ----------------------------- configuration -------------------------------
D_MODEL = 32        # hidden dim
NHEAD = 4           # attention heads
DIM_FF = 64         # feedforward dim
NUM_LAYERS = 3
SEQ = 9             # 1 summary token + 8 points
BATCH = 2
LN_EPS = 1e-5


# ------------------------------ Pallas kernel -------------------------------
def _fused_encoder_kernel(token_ref, xkv_ref, hmask_ref, wkv_ref, bkv_ref,
                          w_row_ref, w_ff2_ref, vec_ref, bff1_ref, out_ref):
    """All encoder layers, whole batch, single invocation (no grid).

    token_ref : (B, D)              initial summary token
    xkv_ref   : (2*B*Skv, D)        rows [0:B*Skv]  = rest + pos   (keys input)
                                    rows [B*Skv: ]  = rest         (values input)
    hmask_ref : (D, D)              block-diagonal head mask, 1/sqrt(dh) folded in
    wkv_ref   : (D, 2*L*D)          [wk_0|..|wk_{L-1}|wv_0|..|wv_{L-1}]
    bkv_ref   : (1, 2*L*D)          [bk_0|..|bk_{L-1}|bv_0|..|bv_{L-1}]
    w_row_ref : (L, D, 2*D+F)       per-layer [wq | wo | w1]  (128 lanes)
    w_ff2_ref : (L, F, D)
    vec_ref   : (L, 7, D)           [bq, bo, ln1_g, ln1_b, ln2_g, ln2_b, b2]
    bff1_ref  : (L, 1, F)
    out_ref   : (L*B, D)            per-layer updated summary token (row l*B+b)
    """
    batch, d = token_ref.shape
    n_kv = xkv_ref.shape[0] // 2
    skv = n_kv // batch
    num_layers = w_row_ref.shape[0]
    ffdim = bff1_ref.shape[-1]

    hmask = hmask_ref[...]                       # (D, D), scale already folded in

    # ---- hoisted, layer-invariant K/V projections for ALL layers ----
    # one lane-dense (2*B*Skv, D) x (D, 2*L*D) matmul; biases added once.
    kvproj = jnp.dot(xkv_ref[...], wkv_ref[...],
                     preferred_element_type=jnp.float32) + bkv_ref[...]

    token = token_ref[...].astype(jnp.float32)   # (B, D)
    toks = []

    for l in range(num_layers):                  # static, unrolled layer loop
        w_row = w_row_ref[l]                     # (D, 2D+F)
        wq = w_row[:, 0:d]
        wo = w_row[:, d:2 * d]
        w1 = w_row[:, 2 * d:2 * d + ffdim]
        vec = vec_ref[l]                         # (7, D)
        bq, bo = vec[0:1], vec[1:2]
        ln1g, ln1b = vec[2:3], vec[3:4]
        ln2g, ln2b = vec[4:5], vec[5:6]
        b2 = vec[6:7]
        b1 = bff1_ref[l]                         # (1, F)

        # per-layer K / V: lane slices of the hoisted projection result
        k3 = kvproj[0:n_kv, l * d:(l + 1) * d].reshape(batch, skv, d)
        v3 = kvproj[n_kv:2 * n_kv,
                    (num_layers + l) * d:(num_layers + l + 1) * d
                    ].reshape(batch, skv, d)

        # ---- multi-head cross-attention (q = token, k = rest+pos, v = rest) ----
        q = jnp.dot(token, wq, preferred_element_type=jnp.float32) + bq      # (B, D)
        prod = k3 * q.reshape(batch, 1, d)                                    # (B, Skv, D)
        # one matmul produces per-head scores broadcast over each head's lanes
        sc = jnp.dot(prod.reshape(n_kv, d), hmask,
                     preferred_element_type=jnp.float32).reshape(batch, skv, d)
        mx = jnp.max(sc, axis=1, keepdims=True)                               # (B, 1, D)
        p = jnp.exp(sc - mx)                                                  # (B, Skv, D)
        num = jnp.sum(p * v3, axis=1, keepdims=True)                          # (B, 1, D)
        den = jnp.sum(p, axis=1, keepdims=True)                               # (B, 1, D)
        ctx = (num / den).reshape(batch, d)                                   # exact softmax
        attn = jnp.dot(ctx, wo, preferred_element_type=jnp.float32) + bo      # (B, D)

        # ---- residual + LayerNorm1 (fused-moment form) ----
        t = token + attn
        mu = jnp.mean(t, axis=-1, keepdims=True)
        ms = jnp.mean(t * t, axis=-1, keepdims=True)
        t = (t - mu) * jax.lax.rsqrt(ms - mu * mu + LN_EPS) * ln1g + ln1b

        # ---- feedforward: linear2(relu(linear1(t))) ----
        h = jnp.dot(t, w1, preferred_element_type=jnp.float32) + b1
        h = jnp.maximum(h, 0.0)
        ff = jnp.dot(h, w_ff2_ref[l], preferred_element_type=jnp.float32) + b2

        # ---- residual + LayerNorm2 ----
        t2 = t + ff
        mu2 = jnp.mean(t2, axis=-1, keepdims=True)
        ms2 = jnp.mean(t2 * t2, axis=-1, keepdims=True)
        t2 = (t2 - mu2) * jax.lax.rsqrt(ms2 - mu2 * mu2 + LN_EPS) * ln2g + ln2b

        toks.append(t2)
        token = t2

    # single store of all per-layer tokens
    out_ref[...] = jnp.concatenate(toks, axis=0).astype(out_ref.dtype)


# --------------------------- host-side weight packing ------------------------
def pack_encoder_params(params):
    """Pack per-layer weights once (call OUTSIDE the jitted forward)."""
    d = D_MODEL
    dh = d // NHEAD
    scale = 1.0 / jnp.sqrt(jnp.float32(dh))

    # per-layer lane-dense slab [wq | wo | w1]  -> (L, D, 2D+F)
    w_row = jnp.stack([jnp.concatenate([p["wq"], p["wo"], p["w1"]], axis=1)
                       for p in params])
    w_ff2 = jnp.stack([p["w2"] for p in params])                     # (L, F, D)
    vecs = jnp.stack([jnp.concatenate(
        [p["bq"], p["bo"], p["ln1_g"], p["ln1_b"],
         p["ln2_g"], p["ln2_b"], p["b2"]], axis=0) for p in params])  # (L, 7, D)
    b_ff1 = jnp.stack([p["b1"] for p in params])                      # (L, 1, F)

    # hoisted K/V slab for all layers (layer-invariant inputs)
    wkv = jnp.concatenate([p["wk"] for p in params]
                          + [p["wv"] for p in params], axis=1)        # (D, 2*L*D)
    bkv = jnp.concatenate([p["bk"] for p in params]
                          + [p["bv"] for p in params], axis=1)        # (1, 2*L*D)

    # block-diagonal head mask with 1/sqrt(dh) folded in
    row_h = jax.lax.broadcasted_iota(jnp.int32, (d, d), 0) // dh
    col_h = jax.lax.broadcasted_iota(jnp.int32, (d, d), 1) // dh
    hmask = (row_h == col_h).astype(jnp.float32) * scale              # (D, D)

    return w_row, w_ff2, vecs, b_ff1, wkv, bkv, hmask


# ------------------------------ host wrapper ---------------------------------
def transformer_encoder_forward(src, packed, pos=None):
    """Mirrors TransformerEncoder.forward.  src, pos: (S, B, D) float32.

    Returns (output (S, B, D), token_list: NUM_LAYERS x (1, B, D))."""
    w_row, w_ff2, vecs, b_ff1, wkv, bkv, hmask = packed
    S, B, D = src.shape
    L = w_row.shape[0]
    skv = S - 1

    token0 = src[0]                                  # (B, D)
    rest = src[1:]                                   # (Skv, B, D) — never changes
    pos_r = jnp.zeros_like(rest) if pos is None else pos[1:]
    key_in = rest + pos_r                            # hoisted: layer-invariant

    def to_rows(x):                                  # (Skv, B, D) -> (B*Skv, D)
        return jnp.transpose(x, (1, 0, 2)).reshape(B * skv, D)

    x_kv = jnp.concatenate([to_rows(key_in), to_rows(rest)], axis=0)  # (2*B*Skv, D)

    vmem = pl.BlockSpec(memory_space=pltpu.MemorySpace.VMEM)
    tokens_flat = pl.pallas_call(
        _fused_encoder_kernel,
        out_shape=jax.ShapeDtypeStruct((L * B, D), src.dtype),
        in_specs=[vmem] * 9,
        out_specs=vmem,
    )(token0, x_kv, hmask, wkv, bkv, w_row, w_ff2, vecs, b_ff1)

    tokens_all = tokens_flat.reshape(L, B, D)
    output = jnp.concatenate([tokens_all[-1:], rest], axis=0)         # (S, B, D)
    token_list = [tokens_all[l:l + 1] for l in range(L)]              # each (1, B, D)
    return output, token_list


# --------------------------- pure-JAX reference -----------------------------
def _layer_ref(src, pos, p):
    token, rest, pos_rest = src[:1], src[1:], pos[1:]
    key_in = rest + pos_rest
    dh = D_MODEL // NHEAD
    scale = 1.0 / jnp.sqrt(jnp.float32(dh))

    def proj(x, w, b):
        return jnp.einsum("sbd,de->sbe", x, w) + b[0]

    q = proj(token, p["wq"], p["bq"])
    k = proj(key_in, p["wk"], p["bk"])
    v = proj(rest, p["wv"], p["bv"])
    qh = q.reshape(1, -1, NHEAD, dh)
    kh = k.reshape(key_in.shape[0], -1, NHEAD, dh)
    vh = v.reshape(rest.shape[0], -1, NHEAD, dh)
    s = jnp.einsum("qbhd,kbhd->bhqk", qh, kh) * scale
    a = jax.nn.softmax(s, axis=-1)
    ctx = jnp.einsum("bhqk,kbhd->qbhd", a, vh).reshape(1, -1, D_MODEL)
    attn = jnp.einsum("sbd,de->sbe", ctx, p["wo"]) + p["bo"][0]

    def ln(x, g, b):
        mu = jnp.mean(x, -1, keepdims=True)
        var = jnp.mean((x - mu) ** 2, -1, keepdims=True)
        return (x - mu) * jax.lax.rsqrt(var + LN_EPS) * g[0] + b[0]

    t = ln(token + attn, p["ln1_g"], p["ln1_b"])
    ff = jnp.einsum("sbd,df->sbf", jnp.maximum(
        jnp.einsum("sbd,df->sbf", t, p["w1"]) + p["b1"][0], 0.0), p["w2"]) + p["b2"][0]
    t = ln(t + ff, p["ln2_g"], p["ln2_b"])
    return jnp.concatenate([t, rest], axis=0), t


def transformer_encoder_ref(src, params, pos):
    out, toks = src, []
    for p in params:
        out, t = _layer_ref(out, pos, p)
        toks.append(t)
    return out, toks


# ------------------------------ param init ----------------------------------
def init_params(key):
    params = []
    for _ in range(NUM_LAYERS):
        ks = jax.random.split(key, 8)
        key = ks[0]

        def w(k, shape, fan_in):
            return jax.random.normal(k, shape, jnp.float32) / jnp.sqrt(fan_in)

        p = {
            "wq": w(ks[1], (D_MODEL, D_MODEL), D_MODEL),
            "bq": jnp.zeros((1, D_MODEL), jnp.float32),
            "wk": w(ks[2], (D_MODEL, D_MODEL), D_MODEL),
            "bk": jnp.zeros((1, D_MODEL), jnp.float32),
            "wv": w(ks[3], (D_MODEL, D_MODEL), D_MODEL),
            "bv": jnp.zeros((1, D_MODEL), jnp.float32),
            "wo": w(ks[4], (D_MODEL, D_MODEL), D_MODEL),
            "bo": jnp.zeros((1, D_MODEL), jnp.float32),
            "ln1_g": jnp.ones((1, D_MODEL), jnp.float32),
            "ln1_b": jnp.zeros((1, D_MODEL), jnp.float32),
            "ln2_g": jnp.ones((1, D_MODEL), jnp.float32),
            "ln2_b": jnp.zeros((1, D_MODEL), jnp.float32),
            "w1": w(ks[5], (D_MODEL, DIM_FF), D_MODEL),
            "b1": jnp.zeros((1, DIM_FF), jnp.float32),
            "w2": w(ks[6], (DIM_FF, D_MODEL), DIM_FF),
            "b2": jnp.zeros((1, D_MODEL), jnp.float32),
        }
        params.append(p)
    return params


# --------------------------------- main --------------------------------------
if __name__ == "__main__":
    key = jax.random.PRNGKey(0)
    k_src, k_pos, k_par = jax.random.split(key, 3)

    src = jax.random.normal(k_src, (SEQ, BATCH, D_MODEL), jnp.float32)
    pos = jax.random.normal(k_pos, (SEQ, BATCH, D_MODEL), jnp.float32) * 0.1
    params = init_params(k_par)

    # Pack once, outside the jitted per-call path.
    packed = pack_encoder_params(params)

    fwd = jax.jit(transformer_encoder_forward)
    out, token_list = fwd(src, packed, pos)
    out = jax.block_until_ready(out)
    token_list = [jax.block_until_ready(t) for t in token_list]

    ref_out, ref_tokens = transformer_encoder_ref(src, params, pos)

    assert out.shape == (SEQ, BATCH, D_MODEL)
    assert len(token_list) == NUM_LAYERS and token_list[0].shape == (1, BATCH, D_MODEL)
    # Exact softmax (no approx reciprocal) -> tight tolerance.
    assert jnp.allclose(out, ref_out, atol=1e-3, rtol=1e-3)
    for t, rt in zip(token_list, ref_tokens):
        assert jnp.allclose(t, rt, atol=1e-3, rtol=1e-3)

    print("KERNEL_OK")
</pallas_src>

<mosaic_0001>
module attributes {stable_mosaic.version = 11 : i64} {
  func.func @_fused_encoder_kernel(%arg0: memref<2x32xf32, #tpu.memory_space<vmem>>, %arg1: memref<32x32xf32, #tpu.memory_space<vmem>>, %arg2: memref<32x32xf32, #tpu.memory_space<vmem>>, %arg3: memref<32x192xf32, #tpu.memory_space<vmem>>, %arg4: memref<1x192xf32, #tpu.memory_space<vmem>>, %arg5: memref<3x32x128xf32, #tpu.memory_space<vmem>>, %arg6: memref<3x64x32xf32, #tpu.memory_space<vmem>>, %arg7: memref<3x7x32xf32, #tpu.memory_space<vmem>>, %arg8: memref<3x1x64xf32, #tpu.memory_space<vmem>>, %arg9: memref<6x32xf32, #tpu.memory_space<vmem>>) attributes {dimension_semantics = [], scalar_prefetch = 0 : i64, scratch_operands = 0 : i64, tpu.core_type = #tpu.core_type<tc>} {
    %c0 = arith.constant 0 : index
    %c0_0 = arith.constant 0 : index
    %0 = vector.load %arg2[%c0, %c0_0] : memref<32x32xf32, #tpu.memory_space<vmem>>, vector<32x32xf32>
    %c0_1 = arith.constant 0 : index
    %c0_2 = arith.constant 0 : index
    %1 = vector.load %arg1[%c0_1, %c0_2] : memref<32x32xf32, #tpu.memory_space<vmem>>, vector<32x32xf32>
    %c0_3 = arith.constant 0 : index
    %c0_4 = arith.constant 0 : index
    %2 = vector.load %arg3[%c0_3, %c0_4] : memref<32x192xf32, #tpu.memory_space<vmem>>, vector<32x192xf32>
    %cst = arith.constant dense<0.000000e+00> : vector<32x192xf32>
    %3 = tpu.matmul %1, %2, %cst {dimension_numbers = #tpu.dot_dimension_numbers<[1], [0], [0], [1], [0, 0, 1, 1], [], []>} : vector<32x32xf32>, vector<32x192xf32>, vector<32x192xf32> -> vector<32x192xf32>
    %c0_5 = arith.constant 0 : index
    %c0_6 = arith.constant 0 : index
    %4 = vector.load %arg4[%c0_5, %c0_6] : memref<1x192xf32, #tpu.memory_space<vmem>>, vector<1x192xf32>
    %5 = vector.broadcast %4 : vector<1x192xf32> to vector<32x192xf32>
    %6 = arith.addf %3, %5 : vector<32x192xf32>
    %c0_7 = arith.constant 0 : index
    %c0_8 = arith.constant 0 : index
    %7 = vector.load %arg0[%c0_7, %c0_8] : memref<2x32xf32, #tpu.memory_space<vmem>>, vector<2x32xf32>
    %c0_9 = arith.constant 0 : index
    %c0_10 = arith.constant 0 : index
    %c0_11 = arith.constant 0 : index
    %8 = vector.load %arg5[%c0_9, %c0_10, %c0_11] : memref<3x32x128xf32, #tpu.memory_space<vmem>>, vector<1x32x128xf32>
    %9 = vector.shape_cast %8 : vector<1x32x128xf32> to vector<32x128xf32>
    %10 = vector.extract_strided_slice %9 {offsets = [0, 0], sizes = [32, 32], strides = [1, 1]} : vector<32x128xf32> to vector<32x32xf32>
    %11 = vector.extract_strided_slice %9 {offsets = [0, 32], sizes = [32, 32], strides = [1, 1]} : vector<32x128xf32> to vector<32x32xf32>
    %12 = vector.extract_strided_slice %9 {offsets = [0, 64], sizes = [32, 64], strides = [1, 1]} : vector<32x128xf32> to vector<32x64xf32>
    %c0_12 = arith.constant 0 : index
    %c0_13 = arith.constant 0 : index
    %c0_14 = arith.constant 0 : index
    %13 = vector.load %arg7[%c0_12, %c0_13, %c0_14] : memref<3x7x32xf32, #tpu.memory_space<vmem>>, vector<1x7x32xf32>
    %14 = vector.shape_cast %13 : vector<1x7x32xf32> to vector<7x32xf32>
    %15 = vector.extract_strided_slice %14 {offsets = [0, 0], sizes = [1, 32], strides = [1, 1]} : vector<7x32xf32> to vector<1x32xf32>
    %16 = vector.extract_strided_slice %14 {offsets = [1, 0], sizes = [1, 32], strides = [1, 1]} : vector<7x32xf32> to vector<1x32xf32>
    %17 = vector.extract_strided_slice %14 {offsets = [2, 0], sizes = [1, 32], strides = [1, 1]} : vector<7x32xf32> to vector<1x32xf32>
    %18 = vector.extract_strided_slice %14 {offsets = [3, 0], sizes = [1, 32], strides = [1, 1]} : vector<7x32xf32> to vector<1x32xf32>
    %19 = vector.extract_strided_slice %14 {offsets = [4, 0], sizes = [1, 32], strides = [1, 1]} : vector<7x32xf32> to vector<1x32xf32>
    %20 = vector.extract_strided_slice %14 {offsets = [5, 0], sizes = [1, 32], strides = [1, 1]} : vector<7x32xf32> to vector<1x32xf32>
    %21 = vector.extract_strided_slice %14 {offsets = [6, 0], sizes = [1, 32], strides = [1, 1]} : vector<7x32xf32> to vector<1x32xf32>
    %c0_15 = arith.constant 0 : index
    %c0_16 = arith.constant 0 : index
    %c0_17 = arith.constant 0 : index
    %22 = vector.load %arg8[%c0_15, %c0_16, %c0_17] : memref<3x1x64xf32, #tpu.memory_space<vmem>>, vector<1x1x64xf32>
    %23 = vector.shape_cast %22 : vector<1x1x64xf32> to vector<1x64xf32>
    %24 = vector.extract_strided_slice %6 {offsets = [0, 0], sizes = [16, 32], strides = [1, 1]} : vector<32x192xf32> to vector<16x32xf32>
    %25 = vector.shape_cast %24 : vector<16x32xf32> to vector<2x8x32xf32>
    %26 = vector.extract_strided_slice %6 {offsets = [16, 96], sizes = [16, 32], strides = [1, 1]} : vector<32x192xf32> to vector<16x32xf32>
    %27 = vector.shape_cast %26 : vector<16x32xf32> to vector<2x8x32xf32>
    %cst_18 = arith.constant dense<0.000000e+00> : vector<2x32xf32>
    %28 = tpu.matmul %7, %10, %cst_18 {dimension_numbers = #tpu.dot_dimension_numbers<[1], [0], [0], [1], [0, 0, 1, 1], [], []>} : vector<2x32xf32>, vector<32x32xf32>, vector<2x32xf32> -> vector<2x32xf32>
    %29 = vector.broadcast %15 : vector<1x32xf32> to vector<2x32xf32>
    %30 = arith.addf %28, %29 : vector<2x32xf32>
    %31 = vector.shape_cast %30 : vector<2x32xf32> to vector<2x1x32xf32>
    %32 = vector.broadcast %31 : vector<2x1x32xf32> to vector<2x8x32xf32>
    %33 = arith.mulf %25, %32 : vector<2x8x32xf32>
    %34 = vector.shape_cast %33 : vector<2x8x32xf32> to vector<16x32xf32>
    %cst_19 = arith.constant dense<0.000000e+00> : vector<16x32xf32>
    %35 = tpu.matmul %34, %0, %cst_19 {dimension_numbers = #tpu.dot_dimension_numbers<[1], [0], [0], [1], [0, 0, 1, 1], [], []>} : vector<16x32xf32>, vector<32x32xf32>, vector<16x32xf32> -> vector<16x32xf32>
    %36 = vector.shape_cast %35 : vector<16x32xf32> to vector<2x8x32xf32>
    %cst_20 = arith.constant dense<0xFF800000> : vector<2x32xf32>
    %37 = vector.multi_reduction <maximumf>, %36, %cst_20 [1] : vector<2x8x32xf32> to vector<2x32xf32>
    %38 = vector.shape_cast %37 : vector<2x32xf32> to vector<2x1x32xf32>
    %39 = vector.broadcast %38 : vector<2x1x32xf32> to vector<2x8x32xf32>
    %40 = arith.subf %36, %39 : vector<2x8x32xf32>
    %41 = math.exp %40 : vector<2x8x32xf32>
    %42 = arith.mulf %41, %27 : vector<2x8x32xf32>
    %cst_21 = arith.constant dense<0.000000e+00> : vector<2x32xf32>
    %43 = vector.multi_reduction <add>, %42, %cst_21 [1] : vector<2x8x32xf32> to vector<2x32xf32>
    %44 = vector.shape_cast %43 : vector<2x32xf32> to vector<2x1x32xf32>
    %cst_22 = arith.constant dense<0.000000e+00> : vector<2x32xf32>
    %45 = vector.multi_reduction <add>, %41, %cst_22 [1] : vector<2x8x32xf32> to vector<2x32xf32>
    %46 = vector.shape_cast %45 : vector<2x32xf32> to vector<2x1x32xf32>
    %47 = arith.divf %44, %46 : vector<2x1x32xf32>
    %48 = vector.shape_cast %47 : vector<2x1x32xf32> to vector<2x32xf32>
    %cst_23 = arith.constant dense<0.000000e+00> : vector<2x32xf32>
    %49 = tpu.matmul %48, %11, %cst_23 {dimension_numbers = #tpu.dot_dimension_numbers<[1], [0], [0], [1], [0, 0, 1, 1], [], []>} : vector<2x32xf32>, vector<32x32xf32>, vector<2x32xf32> -> vector<2x32xf32>
    %50 = vector.broadcast %16 : vector<1x32xf32> to vector<2x32xf32>
    %51 = arith.addf %49, %50 : vector<2x32xf32>
    %52 = arith.addf %7, %51 : vector<2x32xf32>
    %cst_24 = arith.constant dense<0.000000e+00> : vector<2xf32>
    %53 = vector.multi_reduction <add>, %52, %cst_24 [1] : vector<2x32xf32> to vector<2xf32>
    %54 = vector.shape_cast %53 : vector<2xf32> to vector<2x1xf32>
    %cst_25 = arith.constant 3.200000e+01 : f32
    %55 = vector.broadcast %cst_25 : f32 to vector<2x1xf32>
    %56 = arith.divf %54, %55 : vector<2x1xf32>
    %57 = arith.mulf %52, %52 : vector<2x32xf32>
    %cst_26 = arith.constant dense<0.000000e+00> : vector<2xf32>
    %58 = vector.multi_reduction <add>, %57, %cst_26 [1] : vector<2x32xf32> to vector<2xf32>
    %59 = vector.shape_cast %58 : vector<2xf32> to vector<2x1xf32>
    %cst_27 = arith.constant 3.200000e+01 : f32
    %60 = vector.broadcast %cst_27 : f32 to vector<2x1xf32>
    %61 = arith.divf %59, %60 : vector<2x1xf32>
    %62 = vector.broadcast %56 : vector<2x1xf32> to vector<2x32xf32>
    %63 = arith.subf %52, %62 : vector<2x32xf32>
    %64 = arith.mulf %56, %56 : vector<2x1xf32>
    %65 = arith.subf %61, %64 : vector<2x1xf32>
    %cst_28 = arith.constant 9.99999974E-6 : f32
    %66 = vector.broadcast %cst_28 : f32 to vector<2x1xf32>
    %67 = arith.addf %65, %66 : vector<2x1xf32>
    %68 = math.rsqrt %67 : vector<2x1xf32>
    %69 = vector.broadcast %68 : vector<2x1xf32> to vector<2x32xf32>
    %70 = arith.mulf %63, %69 : vector<2x32xf32>
    %71 = vector.broadcast %17 : vector<1x32xf32> to vector<2x32xf32>
    %72 = arith.mulf %70, %71 : vector<2x32xf32>
    %73 = vector.broadcast %18 : vector<1x32xf32> to vector<2x32xf32>
    %74 = arith.addf %72, %73 : vector<2x32xf32>
    %cst_29 = arith.constant dense<0.000000e+00> : vector<2x64xf32>
    %75 = tpu.matmul %74, %12, %cst_29 {dimension_numbers = #tpu.dot_dimension_numbers<[1], [0], [0], [1], [0, 0, 1, 1], [], []>} : vector<2x32xf32>, vector<32x64xf32>, vector<2x64xf32> -> vector<2x64xf32>
    %76 = vector.broadcast %23 : vector<1x64xf32> to vector<2x64xf32>
    %77 = arith.addf %75, %76 : vector<2x64xf32>
    %cst_30 = arith.constant 0.000000e+00 : f32
    %78 = vector.broadcast %cst_30 : f32 to vector<2x64xf32>
    %79 = arith.maximumf %77, %78 : vector<2x64xf32>
    %c0_31 = arith.constant 0 : index
    %c0_32 = arith.constant 0 : index
    %c0_33 = arith.constant 0 : index
    %80 = vector.load %arg6[%c0_31, %c0_32, %c0_33] : memref<3x64x32xf32, #tpu.memory_space<vmem>>, vector<1x64x32xf32>
    %81 = vector.shape_cast %80 : vector<1x64x32xf32> to vector<64x32xf32>
    %cst_34 = arith.constant dense<0.000000e+00> : vector<2x32xf32>
    %82 = tpu.matmul %79, %81, %cst_34 {dimension_numbers = #tpu.dot_dimension_numbers<[1], [0], [0], [1], [0, 0, 1, 1], [], []>} : vector<2x64xf32>, vector<64x32xf32>, vector<2x32xf32> -> vector<2x32xf32>
    %83 = vector.broadcast %21 : vector<1x32xf32> to vector<2x32xf32>
    %84 = arith.addf %82, %83 : vector<2x32xf32>
    %85 = arith.addf %74, %84 : vector<2x32xf32>
    %cst_35 = arith.constant dense<0.000000e+00> : vector<2xf32>
    %86 = vector.multi_reduction <add>, %85, %cst_35 [1] : vector<2x32xf32> to vector<2xf32>
    %87 = vector.shape_cast %86 : vector<2xf32> to vector<2x1xf32>
    %cst_36 = arith.constant 3.200000e+01 : f32
    %88 = vector.broadcast %cst_36 : f32 to vector<2x1xf32>
    %89 = arith.divf %87, %88 : vector<2x1xf32>
    %90 = arith.mulf %85, %85 : vector<2x32xf32>
    %cst_37 = arith.constant dense<0.000000e+00> : vector<2xf32>
    %91 = vector.multi_reduction <add>, %90, %cst_37 [1] : vector<2x32xf32> to vector<2xf32>
    %92 = vector.shape_cast %91 : vector<2xf32> to vector<2x1xf32>
    %cst_38 = arith.constant 3.200000e+01 : f32
    %93 = vector.broadcast %cst_38 : f32 to vector<2x1xf32>
    %94 = arith.divf %92, %93 : vector<2x1xf32>
    %95 = vector.broadcast %89 : vector<2x1xf32> to vector<2x32xf32>
    %96 = arith.subf %85, %95 : vector<2x32xf32>
    %97 = arith.mulf %89, %89 : vector<2x1xf32>
    %98 = arith.subf %94, %97 : vector<2x1xf32>
    %cst_39 = arith.constant 9.99999974E-6 : f32
    %99 = vector.broadcast %cst_39 : f32 to vector<2x1xf32>
    %100 = arith.addf %98, %99 : vector<2x1xf32>
    %101 = math.rsqrt %100 : vector<2x1xf32>
    %102 = vector.broadcast %101 : vector<2x1xf32> to vector<2x32xf32>
    %103 = arith.mulf %96, %102 : vector<2x32xf32>
    %104 = vector.broadcast %19 : vector<1x32xf32> to vector<2x32xf32>
    %105 = arith.mulf %103, %104 : vector<2x32xf32>
    %106 = vector.broadcast %20 : vector<1x32xf32> to vector<2x32xf32>
    %107 = arith.addf %105, %106 : vector<2x32xf32>
    %c1 = arith.constant 1 : index
    %c0_40 = arith.constant 0 : index
    %c0_41 = arith.constant 0 : index
    %108 = vector.load %arg5[%c1, %c0_40, %c0_41] : memref<3x32x128xf32, #tpu.memory_space<vmem>>, vector<1x32x128xf32>
    %109 = vector.shape_cast %108 : vector<1x32x128xf32> to vector<32x128xf32>
    %110 = vector.extract_strided_slice %109 {offsets = [0, 0], sizes = [32, 32], strides = [1, 1]} : vector<32x128xf32> to vector<32x32xf32>
    %111 = vector.extract_strided_slice %109 {offsets = [0, 32], sizes = [32, 32], strides = [1, 1]} : vector<32x128xf32> to vector<32x32xf32>
    %112 = vector.extract_strided_slice %109 {offsets = [0, 64], sizes = [32, 64], strides = [1, 1]} : vector<32x128xf32> to vector<32x64xf32>
    %c1_42 = arith.constant 1 : index
    %c0_43 = arith.constant 0 : index
    %c0_44 = arith.constant 0 : index
    %113 = vector.load %arg7[%c1_42, %c0_43, %c0_44] : memref<3x7x32xf32, #tpu.memory_space<vmem>>, vector<1x7x32xf32>
    %114 = vector.shape_cast %113 : vector<1x7x32xf32> to vector<7x32xf32>
    %115 = vector.extract_strided_slice %114 {offsets = [0, 0], sizes = [1, 32], strides = [1, 1]} : vector<7x32xf32> to vector<1x32xf32>
    %116 = vector.extract_strided_slice %114 {offsets = [1, 0], sizes = [1, 32], strides = [1, 1]} : vector<7x32xf32> to vector<1x32xf32>
    %117 = vector.extract_strided_slice %114 {offsets = [2, 0], sizes = [1, 32], strides = [1, 1]} : vector<7x32xf32> to vector<1x32xf32>
    %118 = vector.extract_strided_slice %114 {offsets = [3, 0], sizes = [1, 32], strides = [1, 1]} : vector<7x32xf32> to vector<1x32xf32>
    %119 = vector.extract_strided_slice %114 {offsets = [4, 0], sizes = [1, 32], strides = [1, 1]} : vector<7x32xf32> to vector<1x32xf32>
    %120 = vector.extract_strided_slice %114 {offsets = [5, 0], sizes = [1, 32], strides = [1, 1]} : vector<7x32xf32> to vector<1x32xf32>
    %121 = vector.extract_strided_slice %114 {offsets = [6, 0], sizes = [1, 32], strides = [1, 1]} : vector<7x32xf32> to vector<1x32xf32>
    %c1_45 = arith.constant 1 : index
    %c0_46 = arith.constant 0 : index
    %c0_47 = arith.constant 0 : index
    %122 = vector.load %arg8[%c1_45, %c0_46, %c0_47] : memref<3x1x64xf32, #tpu.memory_space<vmem>>, vector<1x1x64xf32>
    %123 = vector.shape_cast %122 : vector<1x1x64xf32> to vector<1x64xf32>
    %124 = vector.extract_strided_slice %6 {offsets = [0, 32], sizes = [16, 32], strides = [1, 1]} : vector<32x192xf32> to vector<16x32xf32>
    %125 = vector.shape_cast %124 : vector<16x32xf32> to vector<2x8x32xf32>
    %126 = vector.extract_strided_slice %6 {offsets = [16, 128], sizes = [16, 32], strides = [1, 1]} : vector<32x192xf32> to vector<16x32xf32>
    %127 = vector.shape_cast %126 : vector<16x32xf32> to vector<2x8x32xf32>
    %cst_48 = arith.constant dense<0.000000e+00> : vector<2x32xf32>
    %128 = tpu.matmul %107, %110, %cst_48 {dimension_numbers = #tpu.dot_dimension_numbers<[1], [0], [0], [1], [0, 0, 1, 1], [], []>} : vector<2x32xf32>, vector<32x32xf32>, vector<2x32xf32> -> vector<2x32xf32>
    %129 = vector.broadcast %115 : vector<1x32xf32> to vector<2x32xf32>
    %130 = arith.addf %128, %129 : vector<2x32xf32>
    %131 = vector.shape_cast %130 : vector<2x32xf32> to vector<2x1x32xf32>
    %132 = vector.broadcast %131 : vector<2x1x32xf32> to vector<2x8x32xf32>
    %133 = arith.mulf %125, %132 : vector<2x8x32xf32>
    %134 = vector.shape_cast %133 : vector<2x8x32xf32> to vector<16x32xf32>
    %cst_49 = arith.constant dense<0.000000e+00> : vector<16x32xf32>
    %135 = tpu.matmul %134, %0, %cst_49 {dimension_numbers = #tpu.dot_dimension_numbers<[1], [0], [0], [1], [0, 0, 1, 1], [], []>} : vector<16x32xf32>, vector<32x32xf32>, vector<16x32xf32> -> vector<16x32xf32>
    %136 = vector.shape_cast %135 : vector<16x32xf32> to vector<2x8x32xf32>
    %cst_50 = arith.constant dense<0xFF800000> : vector<2x32xf32>
    %137 = vector.multi_reduction <maximumf>, %136, %cst_50 [1] : vector<2x8x32xf32> to vector<2x32xf32>
    %138 = vector.shape_cast %137 : vector<2x32xf32> to vector<2x1x32xf32>
    %139 = vector.broadcast %138 : vector<2x1x32xf32> to vector<2x8x32xf32>
    %140 = arith.subf %136, %139 : vector<2x8x32xf32>
    %141 = math.exp %140 : vector<2x8x32xf32>
    %142 = arith.mulf %141, %127 : vector<2x8x32xf32>
    %cst_51 = arith.constant dense<0.000000e+00> : vector<2x32xf32>
    %143 = vector.multi_reduction <add>, %142, %cst_51 [1] : vector<2x8x32xf32> to vector<2x32xf32>
    %144 = vector.shape_cast %143 : vector<2x32xf32> to vector<2x1x32xf32>
    %cst_52 = arith.constant dense<0.000000e+00> : vector<2x32xf32>
    %145 = vector.multi_reduction <add>, %141, %cst_52 [1] : vector<2x8x32xf32> to vector<2x32xf32>
    %146 = vector.shape_cast %145 : vector<2x32xf32> to vector<2x1x32xf32>
    %147 = arith.divf %144, %146 : vector<2x1x32xf32>
    %148 = vector.shape_cast %147 : vector<2x1x32xf32> to vector<2x32xf32>
    %cst_53 = arith.constant dense<0.000000e+00> : vector<2x32xf32>
    %149 = tpu.matmul %148, %111, %cst_53 {dimension_numbers = #tpu.dot_dimension_numbers<[1], [0], [0], [1], [0, 0, 1, 1], [], []>} : vector<2x32xf32>, vector<32x32xf32>, vector<2x32xf32> -> vector<2x32xf32>
    %150 = vector.broadcast %116 : vector<1x32xf32> to vector<2x32xf32>
    %151 = arith.addf %149, %150 : vector<2x32xf32>
    %152 = arith.addf %107, %151 : vector<2x32xf32>
    %cst_54 = arith.constant dense<0.000000e+00> : vector<2xf32>
    %153 = vector.multi_reduction <add>, %152, %cst_54 [1] : vector<2x32xf32> to vector<2xf32>
    %154 = vector.shape_cast %153 : vector<2xf32> to vector<2x1xf32>
    %cst_55 = arith.constant 3.200000e+01 : f32
    %155 = vector.broadcast %cst_55 : f32 to vector<2x1xf32>
    %156 = arith.divf %154, %155 : vector<2x1xf32>
    %157 = arith.mulf %152, %152 : vector<2x32xf32>
    %cst_56 = arith.constant dense<0.000000e+00> : vector<2xf32>
    %158 = vector.multi_reduction <add>, %157, %cst_56 [1] : vector<2x32xf32> to vector<2xf32>
    %159 = vector.shape_cast %158 : vector<2xf32> to vector<2x1xf32>
    %cst_57 = arith.constant 3.200000e+01 : f32
    %160 = vector.broadcast %cst_57 : f32 to vector<2x1xf32>
    %161 = arith.divf %159, %160 : vector<2x1xf32>
    %162 = vector.broadcast %156 : vector<2x1xf32> to vector<2x32xf32>
    %163 = arith.subf %152, %162 : vector<2x32xf32>
    %164 = arith.mulf %156, %156 : vector<2x1xf32>
    %165 = arith.subf %161, %164 : vector<2x1xf32>
    %cst_58 = arith.constant 9.99999974E-6 : f32
    %166 = vector.broadcast %cst_58 : f32 to vector<2x1xf32>
    %167 = arith.addf %165, %166 : vector<2x1xf32>
    %168 = math.rsqrt %167 : vector<2x1xf32>
    %169 = vector.broadcast %168 : vector<2x1xf32> to vector<2x32xf32>
    %170 = arith.mulf %163, %169 : vector<2x32xf32>
    %171 = vector.broadcast %117 : vector<1x32xf32> to vector<2x32xf32>
    %172 = arith.mulf %170, %171 : vector<2x32xf32>
    %173 = vector.broadcast %118 : vector<1x32xf32> to vector<2x32xf32>
    %174 = arith.addf %172, %173 : vector<2x32xf32>
    %cst_59 = arith.constant dense<0.000000e+00> : vector<2x64xf32>
    %175 = tpu.matmul %174, %112, %cst_59 {dimension_numbers = #tpu.dot_dimension_numbers<[1], [0], [0], [1], [0, 0, 1, 1], [], []>} : vector<2x32xf32>, vector<32x64xf32>, vector<2x64xf32> -> vector<2x64xf32>
    %176 = vector.broadcast %123 : vector<1x64xf32> to vector<2x64xf32>
    %177 = arith.addf %175, %176 : vector<2x64xf32>
    %cst_60 = arith.constant 0.000000e+00 : f32
    %178 = vector.broadcast %cst_60 : f32 to vector<2x64xf32>
    %179 = arith.maximumf %177, %178 : vector<2x64xf32>
    %c1_61 = arith.constant 1 : index
    %c0_62 = arith.constant 0 : index
    %c0_63 = arith.constant 0 : index
    %180 = vector.load %arg6[%c1_61, %c0_62, %c0_63] : memref<3x64x32xf32, #tpu.memory_space<vmem>>, vector<1x64x32xf32>
    %181 = vector.shape_cast %180 : vector<1x64x32xf32> to vector<64x32xf32>
    %cst_64 = arith.constant dense<0.000000e+00> : vector<2x32xf32>
    %182 = tpu.matmul %179, %181, %cst_64 {dimension_numbers = #tpu.dot_dimension_numbers<[1], [0], [0], [1], [0, 0, 1, 1], [], []>} : vector<2x64xf32>, vector<64x32xf32>, vector<2x32xf32> -> vector<2x32xf32>
    %183 = vector.broadcast %121 : vector<1x32xf32> to vector<2x32xf32>
    %184 = arith.addf %182, %183 : vector<2x32xf32>
    %185 = arith.addf %174, %184 : vector<2x32xf32>
    %cst_65 = arith.constant dense<0.000000e+00> : vector<2xf32>
    %186 = vector.multi_reduction <add>, %185, %cst_65 [1] : vector<2x32xf32> to vector<2xf32>
    %187 = vector.shape_cast %186 : vector<2xf32> to vector<2x1xf32>
    %cst_66 = arith.constant 3.200000e+01 : f32
    %188 = vector.broadcast %cst_66 : f32 to vector<2x1xf32>
    %189 = arith.divf %187, %188 : vector<2x1xf32>
    %190 = arith.mulf %185, %185 : vector<2x32xf32>
    %cst_67 = arith.constant dense<0.000000e+00> : vector<2xf32>
    %191 = vector.multi_reduction <add>, %190, %cst_67 [1] : vector<2x32xf32> to vector<2xf32>
    %192 = vector.shape_cast %191 : vector<2xf32> to vector<2x1xf32>
    %cst_68 = arith.constant 3.200000e+01 : f32
    %193 = vector.broadcast %cst_68 : f32 to vector<2x1xf32>
    %194 = arith.divf %192, %193 : vector<2x1xf32>
    %195 = vector.broadcast %189 : vector<2x1xf32> to vector<2x32xf32>
    %196 = arith.subf %185, %195 : vector<2x32xf32>
    %197 = arith.mulf %189, %189 : vector<2x1xf32>
    %198 = arith.subf %194, %197 : vector<2x1xf32>
    %cst_69 = arith.constant 9.99999974E-6 : f32
    %199 = vector.broadcast %cst_69 : f32 to vector<2x1xf32>
    %200 = arith.addf %198, %199 : vector<2x1xf32>
    %201 = math.rsqrt %200 : vector<2x1xf32>
    %202 = vector.broadcast %201 : vector<2x1xf32> to vector<2x32xf32>
    %203 = arith.mulf %196, %202 : vector<2x32xf32>
    %204 = vector.broadcast %119 : vector<1x32xf32> to vector<2x32xf32>
    %205 = arith.mulf %203, %204 : vector<2x32xf32>
    %206 = vector.broadcast %120 : vector<1x32xf32> to vector<2x32xf32>
    %207 = arith.addf %205, %206 : vector<2x32xf32>
    %c2 = arith.constant 2 : index
    %c0_70 = arith.constant 0 : index
    %c0_71 = arith.constant 0 : index
    %208 = vector.load %arg5[%c2, %c0_70, %c0_71] : memref<3x32x128xf32, #tpu.memory_space<vmem>>, vector<1x32x128xf32>
    %209 = vector.shape_cast %208 : vector<1x32x128xf32> to vector<32x128xf32>
    %210 = vector.extract_strided_slice %209 {offsets = [0, 0], sizes = [32, 32], strides = [1, 1]} : vector<32x128xf32> to vector<32x32xf32>
    %211 = vector.extract_strided_slice %209 {offsets = [0, 32], sizes = [32, 32], strides = [1, 1]} : vector<32x128xf32> to vector<32x32xf32>
    %212 = vector.extract_strided_slice %209 {offsets = [0, 64], sizes = [32, 64], strides = [1, 1]} : vector<32x128xf32> to vector<32x64xf32>
    %c2_72 = arith.constant 2 : index
    %c0_73 = arith.constant 0 : index
    %c0_74 = arith.constant 0 : index
    %213 = vector.load %arg7[%c2_72, %c0_73, %c0_74] : memref<3x7x32xf32, #tpu.memory_space<vmem>>, vector<1x7x32xf32>
    %214 = vector.shape_cast %213 : vector<1x7x32xf32> to vector<7x32xf32>
    %215 = vector.extract_strided_slice %214 {offsets = [0, 0], sizes = [1, 32], strides = [1, 1]} : vector<7x32xf32> to vector<1x32xf32>
    %216 = vector.extract_strided_slice %214 {offsets = [1, 0], sizes = [1, 32], strides = [1, 1]} : vector<7x32xf32> to vector<1x32xf32>
    %217 = vector.extract_strided_slice %214 {offsets = [2, 0], sizes = [1, 32], strides = [1, 1]} : vector<7x32xf32> to vector<1x32xf32>
    %218 = vector.extract_strided_slice %214 {offsets = [3, 0], sizes = [1, 32], strides = [1, 1]} : vector<7x32xf32> to vector<1x32xf32>
    %219 = vector.extract_strided_slice %214 {offsets = [4, 0], sizes = [1, 32], strides = [1, 1]} : vector<7x32xf32> to vector<1x32xf32>
    %220 = vector.extract_strided_slice %214 {offsets = [5, 0], sizes = [1, 32], strides = [1, 1]} : vector<7x32xf32> to vector<1x32xf32>
    %221 = vector.extract_strided_slice %214 {offsets = [6, 0], sizes = [1, 32], strides = [1, 1]} : vector<7x32xf32> to vector<1x32xf32>
    %c2_75 = arith.constant 2 : index
    %c0_76 = arith.constant 0 : index
    %c0_77 = arith.constant 0 : index
    %222 = vector.load %arg8[%c2_75, %c0_76, %c0_77] : memref<3x1x64xf32, #tpu.memory_space<vmem>>, vector<1x1x64xf32>
    %223 = vector.shape_cast %222 : vector<1x1x64xf32> to vector<1x64xf32>
    %224 = vector.extract_strided_slice %6 {offsets = [0, 64], sizes = [16, 32], strides = [1, 1]} : vector<32x192xf32> to vector<16x32xf32>
    %225 = vector.shape_cast %224 : vector<16x32xf32> to vector<2x8x32xf32>
    %226 = vector.extract_strided_slice %6 {offsets = [16, 160], sizes = [16, 32], strides = [1, 1]} : vector<32x192xf32> to vector<16x32xf32>
    %227 = vector.shape_cast %226 : vector<16x32xf32> to vector<2x8x32xf32>
    %cst_78 = arith.constant dense<0.000000e+00> : vector<2x32xf32>
    %228 = tpu.matmul %207, %210, %cst_78 {dimension_numbers = #tpu.dot_dimension_numbers<[1], [0], [0], [1], [0, 0, 1, 1], [], []>} : vector<2x32xf32>, vector<32x32xf32>, vector<2x32xf32> -> vector<2x32xf32>
    %229 = vector.broadcast %215 : vector<1x32xf32> to vector<2x32xf32>
    %230 = arith.addf %228, %229 : vector<2x32xf32>
    %231 = vector.shape_cast %230 : vector<2x32xf32> to vector<2x1x32xf32>
    %232 = vector.broadcast %231 : vector<2x1x32xf32> to vector<2x8x32xf32>
    %233 = arith.mulf %225, %232 : vector<2x8x32xf32>
    %234 = vector.shape_cast %233 : vector<2x8x32xf32> to vector<16x32xf32>
    %cst_79 = arith.constant dense<0.000000e+00> : vector<16x32xf32>
    %235 = tpu.matmul %234, %0, %cst_79 {dimension_numbers = #tpu.dot_dimension_numbers<[1], [0], [0], [1], [0, 0, 1, 1], [], []>} : vector<16x32xf32>, vector<32x32xf32>, vector<16x32xf32> -> vector<16x32xf32>
    %236 = vector.shape_cast %235 : vector<16x32xf32> to vector<2x8x32xf32>
    %cst_80 = arith.constant dense<0xFF800000> : vector<2x32xf32>
    %237 = vector.multi_reduction <maximumf>, %236, %cst_80 [1] : vector<2x8x32xf32> to vector<2x32xf32>
    %238 = vector.shape_cast %237 : vector<2x32xf32> to vector<2x1x32xf32>
    %239 = vector.broadcast %238 : vector<2x1x32xf32> to vector<2x8x32xf32>
    %240 = arith.subf %236, %239 : vector<2x8x32xf32>
    %241 = math.exp %240 : vector<2x8x32xf32>
    %242 = arith.mulf %241, %227 : vector<2x8x32xf32>
    %cst_81 = arith.constant dense<0.000000e+00> : vector<2x32xf32>
    %243 = vector.multi_reduction <add>, %242, %cst_81 [1] : vector<2x8x32xf32> to vector<2x32xf32>
    %244 = vector.shape_cast %243 : vector<2x32xf32> to vector<2x1x32xf32>
    %cst_82 = arith.constant dense<0.000000e+00> : vector<2x32xf32>
    %245 = vector.multi_reduction <add>, %241, %cst_82 [1] : vector<2x8x32xf32> to vector<2x32xf32>
    %246 = vector.shape_cast %245 : vector<2x32xf32> to vector<2x1x32xf32>
    %247 = arith.divf %244, %246 : vector<2x1x32xf32>
    %248 = vector.shape_cast %247 : vector<2x1x32xf32> to vector<2x32xf32>
    %cst_83 = arith.constant dense<0.000000e+00> : vector<2x32xf32>
    %249 = tpu.matmul %248, %211, %cst_83 {dimension_numbers = #tpu.dot_dimension_numbers<[1], [0], [0], [1], [0, 0, 1, 1], [], []>} : vector<2x32xf32>, vector<32x32xf32>, vector<2x32xf32> -> vector<2x32xf32>
    %250 = vector.broadcast %216 : vector<1x32xf32> to vector<2x32xf32>
    %251 = arith.addf %249, %250 : vector<2x32xf32>
    %252 = arith.addf %207, %251 : vector<2x32xf32>
    %cst_84 = arith.constant dense<0.000000e+00> : vector<2xf32>
    %253 = vector.multi_reduction <add>, %252, %cst_84 [1] : vector<2x32xf32> to vector<2xf32>
    %254 = vector.shape_cast %253 : vector<2xf32> to vector<2x1xf32>
    %cst_85 = arith.constant 3.200000e+01 : f32
    %255 = vector.broadcast %cst_85 : f32 to vector<2x1xf32>
    %256 = arith.divf %254, %255 : vector<2x1xf32>
    %257 = arith.mulf %252, %252 : vector<2x32xf32>
    %cst_86 = arith.constant dense<0.000000e+00> : vector<2xf32>
    %258 = vector.multi_reduction <add>, %257, %cst_86 [1] : vector<2x32xf32> to vector<2xf32>
    %259 = vector.shape_cast %258 : vector<2xf32> to vector<2x1xf32>
    %cst_87 = arith.constant 3.200000e+01 : f32
    %260 = vector.broadcast %cst_87 : f32 to vector<2x1xf32>
    %261 = arith.divf %259, %260 : vector<2x1xf32>
    %262 = vector.broadcast %256 : vector<2x1xf32> to vector<2x32xf32>
    %263 = arith.subf %252, %262 : vector<2x32xf32>
    %264 = arith.mulf %256, %256 : vector<2x1xf32>
    %265 = arith.subf %261, %264 : vector<2x1xf32>
    %cst_88 = arith.constant 9.99999974E-6 : f32
    %266 = vector.broadcast %cst_88 : f32 to vector<2x1xf32>
    %267 = arith.addf %265, %266 : vector<2x1xf32>
    %268 = math.rsqrt %267 : vector<2x1xf32>
    %269 = vector.broadcast %268 : vector<2x1xf32> to vector<2x32xf32>
    %270 = arith.mulf %263, %269 : vector<2x32xf32>
    %271 = vector.broadcast %217 : vector<1x32xf32> to vector<2x32xf32>
    %272 = arith.mulf %270, %271 : vector<2x32xf32>
    %273 = vector.broadcast %218 : vector<1x32xf32> to vector<2x32xf32>
    %274 = arith.addf %272, %273 : vector<2x32xf32>
    %cst_89 = arith.constant dense<0.000000e+00> : vector<2x64xf32>
    %275 = tpu.matmul %274, %212, %cst_89 {dimension_numbers = #tpu.dot_dimension_numbers<[1], [0], [0], [1], [0, 0, 1, 1], [], []>} : vector<2x32xf32>, vector<32x64xf32>, vector<2x64xf32> -> vector<2x64xf32>
    %276 = vector.broadcast %223 : vector<1x64xf32> to vector<2x64xf32>
    %277 = arith.addf %275, %276 : vector<2x64xf32>
    %cst_90 = arith.constant 0.000000e+00 : f32
    %278 = vector.broadcast %cst_90 : f32 to vector<2x64xf32>
    %279 = arith.maximumf %277, %278 : vector<2x64xf32>
    %c2_91 = arith.constant 2 : index
    %c0_92 = arith.constant 0 : index
    %c0_93 = arith.constant 0 : index
    %280 = vector.load %arg6[%c2_91, %c0_92, %c0_93] : memref<3x64x32xf32, #tpu.memory_space<vmem>>, vector<1x64x32xf32>
    %281 = vector.shape_cast %280 : vector<1x64x32xf32> to vector<64x32xf32>
    %cst_94 = arith.constant dense<0.000000e+00> : vector<2x32xf32>
    %282 = tpu.matmul %279, %281, %cst_94 {dimension_numbers = #tpu.dot_dimension_numbers<[1], [0], [0], [1], [0, 0, 1, 1], [], []>} : vector<2x64xf32>, vector<64x32xf32>, vector<2x32xf32> -> vector<2x32xf32>
    %283 = vector.broadcast %221 : vector<1x32xf32> to vector<2x32xf32>
    %284 = arith.addf %282, %283 : vector<2x32xf32>
    %285 = arith.addf %274, %284 : vector<2x32xf32>
    %cst_95 = arith.constant dense<0.000000e+00> : vector<2xf32>
    %286 = vector.multi_reduction <add>, %285, %cst_95 [1] : vector<2x32xf32> to vector<2xf32>
    %287 = vector.shape_cast %286 : vector<2xf32> to vector<2x1xf32>
    %cst_96 = arith.constant 3.200000e+01 : f32
    %288 = vector.broadcast %cst_96 : f32 to vector<2x1xf32>
    %289 = arith.divf %287, %288 : vector<2x1xf32>
    %290 = arith.mulf %285, %285 : vector<2x32xf32>
    %cst_97 = arith.constant dense<0.000000e+00> : vector<2xf32>
    %291 = vector.multi_reduction <add>, %290, %cst_97 [1] : vector<2x32xf32> to vector<2xf32>
    %292 = vector.shape_cast %291 : vector<2xf32> to vector<2x1xf32>
    %cst_98 = arith.constant 3.200000e+01 : f32
    %293 = vector.broadcast %cst_98 : f32 to vector<2x1xf32>
    %294 = arith.divf %292, %293 : vector<2x1xf32>
    %295 = vector.broadcast %289 : vector<2x1xf32> to vector<2x32xf32>
    %296 = arith.subf %285, %295 : vector<2x32xf32>
    %297 = arith.mulf %289, %289 : vector<2x1xf32>
    %298 = arith.subf %294, %297 : vector<2x1xf32>
    %cst_99 = arith.constant 9.99999974E-6 : f32
    %299 = vector.broadcast %cst_99 : f32 to vector<2x1xf32>
    %300 = arith.addf %298, %299 : vector<2x1xf32>
    %301 = math.rsqrt %300 : vector<2x1xf32>
    %302 = vector.broadcast %301 : vector<2x1xf32> to vector<2x32xf32>
    %303 = arith.mulf %296, %302 : vector<2x32xf32>
    %304 = vector.broadcast %219 : vector<1x32xf32> to vector<2x32xf32>
    %305 = arith.mulf %303, %304 : vector<2x32xf32>
    %306 = vector.broadcast %220 : vector<1x32xf32> to vector<2x32xf32>
    %307 = arith.addf %305, %306 : vector<2x32xf32>
    %308 = tpu.concatenate %107, %207, %307 in 0 : vector<2x32xf32>, vector<2x32xf32>, vector<2x32xf32> -> vector<6x32xf32>
    %c0_100 = arith.constant 0 : index
    %c0_101 = arith.constant 0 : index
    %309 = vector.load %arg9[%c0_100, %c0_101] : memref<6x32xf32, #tpu.memory_space<vmem>>, vector<6x32xf32>
    tpu.vector_store %arg9[%c0_100, %c0_101], %308 {strides = array<i32>} : memref<6x32xf32, #tpu.memory_space<vmem>>, vector<6x32xf32>,
    return
  }
}

</mosaic_0001>

<bundles_post_ra>
// kernel: transformer_encoder_forward.1
= control target key start
LH: loop header
LB: loop body
LE: loop exit
PB: predicated region body
PF: predicated region fallthrough
CT: control target
= control target key end

     0   :  { %v2333_v3 = vmov 0.0   ;;  %vm60_vm0 = vcmask 261120   ;;  %vm2334_vm1 = vmmov 0   ;;  %v50_v22 = vlaneseq  ;;  %s2335_s29 = smov 96   ;;  %s2976_s3 = inlined_call_operand.vmem [shape: f32[32,192], index: 3, kind: input, shape index: {}]   ;;  %s2977_s1 = inlined_call_operand.vmem [shape: f32[32,32], index: 1, kind: input, shape index: {}]   ;;  %s2978_s5 = inlined_call_operand.vmem [shape: f32[3,32,128], index: 5, kind: input, shape index: {}]   ;;  %s2979_s0 = inlined_call_operand.vmem [shape: f32[2,32], index: 0, kind: input, shape index: {}]   ;;  %s2980_s2 = inlined_call_operand.vmem [shape: f32[32,32], index: 2, kind: input, shape index: {}]   ;;  %s2981_s4 = inlined_call_operand.vmem [shape: f32[1,192], index: 4, kind: input, shape index: {}]   ;;  %s2982_s7 = inlined_call_operand.vmem [shape: f32[3,7,32], index: 7, kind: input, shape index: {}]   ;;  %s2983_s6 = inlined_call_operand.vmem [shape: f32[3,64,32], index: 6, kind: input, shape index: {}]   ;;  %s2984_s8 = inlined_call_operand.vmem [shape: f32[3,1,64], index: 8, kind: input, shape index: {}]   ;;  %s2985_s9 = inlined_call_operand.vmem [shape: f32[6,32], index: 9, kind: output, shape index: {}]  }
   0x1   :  { %v47_v0 = vld [vmem:[%s2976_s3 + $0x38] sm:$0xff]  ;;  %v46_v1 = vld [vmem:[%s2976_s3 + $0x30] sm:$0xff]  ;;  %v45_v2 = vld [vmem:[%s2976_s3 + $0x28] sm:$0xff]  ;;  %147 = vmatprep.mubr.f32.mxu1 %v2333_v3  ;;  %137 = vmatprep.mubr.f32.mxu0 %v2333_v3  ;;  %v2336_v27 = vmov 1966171168   ;;  %vm428_vm2 = vcmask 1041409  }
   0x2   :  { %2283 = vmatprep.subr.mxu1 %v47_v0  ;;  %v44_v4 = vld [vmem:[%s2976_s3 + $0x20] sm:$0xff]  ;;  %97 = vmatprep.subr.mxu0 %v47_v0  ;;  %v43_v5 = vld [vmem:[%s2976_s3 + $0x18] sm:$0xff]  ;;  %v42_v6 = vld [vmem:[%s2976_s3 + $0x10] sm:$0xff]  ;;  %v2502_v23 = vshrl.u32 %v50_v22, 7  ;;  %v246_v28 = vunpack.c.l.s4 %v2336_v27  ;;  %vm519_vm3 = vcmask 254976   ;;  %vm650_vm4 = vcmask 523264  }
   0x3   :  { %2287 = vmatpush1.msra.mxu1 %v46_v1  ;;  %98 = vmatpush1.msra.mxu0 %v46_v1  ;;  %v41_v7 = vld [vmem:[%s2976_s3 + $0x8] sm:$0xff]  ;;  %v40_v8 = vld [vmem:[%s2976_s3] sm:$0xff]  ;;  %v38_v9 = vld [vmem:[%s2977_s1 + $0x10] sm:$0xff]  ;;  %s2338_s3 = smov 64   ;;  %vm1941_vm5 = vcmask 1041408   ;;  %vm1943_vm6 = vcmask 1043456  }
   0x4   :  { %2284 = vmatprep.subr.mxu1 %v45_v2  ;;  %99 = vmatprep.subr.mxu0 %v45_v2  ;;  %v2421_v10 = vld [vmem:[%s2978_s5 + $0x18] sm:$0xff]  ;;  %v36_v11 = vld [vmem:[%s2977_s1] sm:$0xff]  ;;  %v2431_v12 = vld [vmem:[%s2978_s5 + $0x10] sm:$0xff]  ;;  %v2505_v24 = vsub.s32 0, %v2502_v23  ;;  %v247_v34 = vunpack.c.0.s8 %v246_v28  ;;  %vm1945_vm7 = vcmask 259072  }
   0x5   :  { %2288 = vmatpush1.msra.mxu1 %v44_v4  ;;  %100 = vmatpush1.msra.mxu0 %v44_v4  ;;  %v39_v13 = vld [vmem:[%s2977_s1 + $0x18] sm:$0xff]  ;;  %v2442_v14 = vld [vmem:[%s2978_s5 + $0x8] sm:$0xff]  ;;  %v2455_v16 = vld [vmem:[%s2978_s5] sm:$0xff] }
   0x6   :  { %2285 = vmatprep.subr.mxu1 %v43_v5  ;;  %101 = vmatprep.subr.mxu0 %v43_v5  ;;  %v37_v15 = vld [vmem:[%s2977_s1 + $0x8] sm:$0xff]  ;;  %v2463_v17 = vld [vmem:[%s2979_s0] sm:$0x3]  ;;  %v2476_v18 = vld [vmem:[%s2980_s2 + $0x18] sm:$0xff]  ;;  %v2534_v41 = vsub.s32 %v247_v34, %v2502_v23 }
   0x7   :  { %2289 = vmatpush1.msra.mxu1 %v42_v6  ;;  %102 = vmatpush1.msra.mxu0 %v42_v6  ;;  %v2483_v19 = vld [vmem:[%s2980_s2 + $0x10] sm:$0xff]  ;;  %v2490_v20 = vld [vmem:[%s2980_s2 + $0x8] sm:$0xff]  ;;  %v2497_v21 = vld [vmem:[%s2980_s2] sm:$0xff] }
   0x8   :  { %2286 = vmatprep.subr.mxu1 %v41_v7  ;;  %103 = vmatprep.subr.mxu0 %v41_v7  ;;  %v2510_v25 = vld [vmem:[%s2981_s4] sm:$0x3]  ;;  %s2337_s4 = smov 32  }
   0x9   :  { %2290 = vmatpush1.msra.mxu1 %v40_v8  ;;  %104 = vmatpush1.msra.mxu0 %v40_v8  ;;  %v53_v26 = vrot.slane %v2510_v25, %v2505_v24  ;;  %v2523_v32 = vld [vmem:[%s2982_s7] sm:$0x7f] }
   0xa   :  { %1953 = vmatmul.mubr.msk.f32.vlgmr.msra.gmra.mxu1 %vm60_vm0, %v38_v9  ;;  %2094 = vmatprep.subr.mxu1 %v2333_v3  ;;  %v170_v38 = vrot.slane %v2523_v32, %v2505_v24 }
   0xb   :  { %2095 = vmatpush3.msra.mxu1 %v2421_v10  ;;  %153 = vmatprep.mubr.f32.mxu1 %v2333_v3 }
   0xc   :  { %2096 = vmatprep.subr.mxu1 %v2333_v3  ;;  %1951 = vmatmul.mubr.msk.f32.vlgmr.msra.gmra.mxu0 %vm60_vm0, %v36_v11 }
   0xd   :  { %2097 = vmatpush3.msra.mxu1 %v2431_v12  ;;  %142 = vmatprep.mubr.f32.mxu0 %v2333_v3 }
   0xe   :  { %1954 = vmatmul.mubr.msk.f32.gmra.mxu1 %vm60_vm0, %v39_v13  ;;  %2098 = vmatprep.subr.mxu1 %v2333_v3 }
   0xf   :  { %2099 = vmatpush3.msra.mxu1 %v2442_v14  ;;  %2102 = vmatprep.mubr.msk.f32.mxu1 %vm2334_vm1, %v2333_v3 }
  0x10   :  { %2100 = vmatprep.subr.mxu1 %v2333_v3  ;;  %1952 = vmatmul.mubr.msk.f32.gmra.mxu0 %vm60_vm0, %v37_v15 }
  0x11   :  { %2101 = vmatpush3.msra.mxu1 %v2455_v16  ;;  %2116 = vmatprep.subr.mxu0 %v2333_v3 }
  0x12   :  { %2103 = vmatmul.mubr.msk.f32.vlgmr.msra.gmra.mxu1 %vm60_vm0, %v2463_v17  ;;  %2124 = vmatprep.mubr.msk.f32.mxu0 %vm2334_vm1, %v2333_v3 }
  0x13   :  { %2105 = vmatprep.subr.mxu1 %v2476_v18  ;;  %440 = vrot.lane.b32.xlu1 %v2421_v10, %s2335_s29 }
  0x14   :  { %2106 = vmatpush3.msra.mxu1 %v2476_v18 }
  0x15   :  { %2107 = vmatprep.subr.mxu1 %v2483_v19 }
  0x16   :  { %2108 = vmatpush3.msra.mxu1 %v2483_v19 }
  0x17   :  { %2109 = vmatprep.subr.mxu1 %v2490_v20  ;;  %438 = vrot.lane.b32.xlu1 %v2431_v12, %s2335_s29 }
  0x18   :  { %2110 = vmatpush3.msra.mxu1 %v2490_v20 }
  0x19   :  { %2111 = vmatprep.subr.mxu1 %v2497_v21 }
  0x1a   :  { %2112 = vmatpush3.msra.mxu1 %v2497_v21 }
  0x1b   :  { %2127 = vmatprep.subr.mxu1 %v2333_v3  ;;  %434 = vrot.lane.b32.xlu1 %v2455_v16, %s2335_s29 }
  0x85   :  { %v441_v58 = vpop.permute.xlu1 %440 }
  0x86   :  { %2117 = vmatpush3.msra.mxu0 %v441_v58 }
  0x87   :  { %2118 = vmatprep.subr.mxu0 %v2333_v3 }
  0x89   :  { %v439_v59 = vpop.permute.xlu1 %438 }
  0x8a   :  { %2119 = vmatpush3.msra.mxu0 %v439_v59 }
  0x8b   :  { %2120 = vmatprep.subr.mxu0 %v2333_v3 }
  0x8d   :  { %v435_v61 = vpop.permute.xlu1 %434 }
  0xca   :  { %v149_v29 = vpop.f32.mrf.mxu1 }
  0xcb   :  { %v150_v30 = vadd.f32 %v149_v29, %v53_v26 }
  0xcc   :  { %v2518_v31 = vpop.f32.mrf.mxu1  ;;  %v139_v33 = vpop.f32.mrf.mxu0 }
  0xcd   :  { %382 = vrot.lane.b32.xlu0 %v150_v30, %s2337_s4  ;;  %v2542_v51 = vadd.f32 %v139_v33, %v53_v26 }
  0xce   :  { %v155_v35 = vpop.f32.mrf.mxu1  ;;  %v141_v36 = vpop.f32.mrf.mxu0 }
  0xcf   :  { %v156_v37 = vadd.f32 %v155_v35, %v53_v26 }
  0xd0   :  { %v2530_v39 = vpop.f32.mrf.mxu1  ;;  %v144_v40 = vpop.f32.mrf.mxu0 }
  0xd1   :  { %384 = vrot.lane.b32.xlu0 %v156_v37, %s2337_s4  ;;  %v2544_v52 = vadd.f32 %v144_v40, %v53_v26 }
  0xd2   :  { %v240_v42 = vpop.f32.mrf.mxu1  ;;  %v146_v43 = vpop.f32.mrf.mxu0 }
  0xd3   :  { %v241_v44 = vadd.f32 %v240_v42, %v170_v38 }
  0xd4   :  { %v2104_v45 = vpop.f32.mrf.mxu1 }
  0xd5   :  { %v251_v46 = vrot.slane %v241_v44, %v2534_v41  ;;  %436 = vrot.lane.b32.xlu0 %v2442_v14, %s2335_s29 }
  0xd7   :  { %v252_v47 = vcombine.high %v251_v46, %v251_v46  ;;  %v259_v48 = vrot.slane %v251_v46, %v2534_v41 }
  0xd9   :  { %v266_v49 = vrot.slane %v252_v47, %v2534_v41  ;;  %v270_v50 = vrot.slane %v259_v48, %v2505_v24 }
  0xdb   :  { %v277_v53 = vmul.f32 %v270_v50, %v2542_v51  ;;  %v274_v54 = vrot.slane %v266_v49, %v2505_v24 }
  0xdd   :  { %v278_v55 = vmul.f32 %v274_v54, %v2544_v52  ;;  %2113 = vmatprep.mubr.msk.f32.mxu1 %vm60_vm0, %v277_v53 }
  0xdf   :  { %2114 = vmatmul.mubr.msk.f32.vlgmr.msra.gmra.mxu1 %vm60_vm0, %v278_v55 }
  0xe0   :  { %2135 = vmatprep.mubr.msk.f32.mxu1 %vm2334_vm1, %v2333_v3 }
 0x13f   :  { %v383_v56 = vpop.permute.xlu0 %382 }
 0x143   :  { %v385_v57 = vpop.permute.xlu0 %384 }
 0x147   :  { %v437_v60 = vpop.permute.xlu0 %436 }
 0x148   :  { %2121 = vmatpush3.msra.mxu0 %v437_v60 }
 0x149   :  { %2122 = vmatprep.subr.mxu0 %v2333_v3 }
 0x14a   :  { %2123 = vmatpush3.msra.mxu0 %v435_v61 }
 0x14b   :  { %2138 = vmatprep.subr.mxu0 %v2333_v3 }
 0x19f   :  { %v2115_v62 = vpop.f32.mrf.mxu1 }
 0x1a0   :  { %v367_v63 = vsel %vm60_vm0, %v2115_v62, -inf }
 0x1a1   :  { %v368_v0 = vrot.slane %v367_v63, 4  ;;  %v351_v1 = vpop.f32.mrf.mxu1 }
 0x1a2   :  { %v360_v2 = vsel %vm60_vm0, %v351_v1, -inf }
 0x1a3   :  { %v369_v4 = vmax.f32 %v367_v63, %v368_v0  ;;  %v361_v5 = vrot.slane %v360_v2, 4 }
 0x1a5   :  { %v370_v6 = vrot.slane %v369_v4, 2  ;;  %v362_v7 = vmax.f32 %v360_v2, %v361_v5 }
 0x1a7   :  { %v371_v8 = vmax.f32 %v369_v4, %v370_v6  ;;  %v363_v9 = vrot.slane %v362_v7, 2 }
 0x1a9   :  { %v372_v11 = vrot.slane %v371_v8, 1  ;;  %v364_v13 = vmax.f32 %v362_v7, %v363_v9 }
 0x1ab   :  { %v373_v15 = vmax.f32 %v371_v8, %v372_v11  ;;  %v365_v22 = vrot.slane %v364_v13, 1 }
 0x1ad   :  { %v375_v26 = vsub.f32 %v2115_v62, %v373_v15  ;;  %v366_v27 = vmax.f32 %v364_v13, %v365_v22  ;;  %v2568_v13 = vsub.s32 1, %v2502_v23 }
 0x1af   :  { %v378_v28 = vmul.f32 1.442695, %v375_v26  ;;  %v374_v29 = vsub.f32 %v351_v1, %v366_v27  ;;  %v425_v15 = vrot.slane %v2523_v32, %v2568_v13 }
 0x1b1   :  { %2297 = vpow2.f32 %v378_v28  ;;  %v376_v30 = vmul.f32 1.442695, %v374_v29 }
 0x1b3   :  { %2299 = vpow2.f32 %v376_v30 }
 0x1be   :  { %v2298_v33 = vpop.eup %2297 }
 0x1bf   :  { %v389_v34 = vmul.f32 %v2298_v33, %v385_v57  ;;  %v411_v35 = vsel %vm60_vm0, %v2298_v33, 0.0 }
 0x1c0   :  { %v2300_v36 = vpop.eup %2299  ;;  %v412_v37 = vrot.slane %v411_v35, 4 }
 0x1c1   :  { %v388_v38 = vmul.f32 %v2300_v36, %v383_v56  ;;  %v404_v40 = vsel %vm60_vm0, %v2300_v36, 0.0  ;;  %v397_v44 = vsel %vm60_vm0, %v389_v34, 0.0  ;;  %v644_v34 = vld [vmem:[%s2983_s6 + $0x30] sm:$0xff] }
 0x1c2   :  { %v413_v42 = vadd.f32 %v412_v37, %v411_v35  ;;  %v405_v43 = vrot.slane %v404_v40, 4  ;;  %v398_v48 = vrot.slane %v397_v44, 4 }
 0x1c3   :  { %v390_v45 = vsel %vm60_vm0, %v388_v38, 0.0 }
 0x1c4   :  { %v414_v46 = vrot.slane %v413_v42, 2  ;;  %v406_v47 = vadd.f32 %v405_v43, %v404_v40  ;;  %v391_v50 = vrot.slane %v390_v45, 4  ;;  %v399_v56 = vadd.f32 %v398_v48, %v397_v44 }
 0x1c5   :  { %v2611_v48 = vsub.s32 3, %v2502_v23 }
 0x1c6   :  { %v415_v49 = vadd.f32 %v414_v46, %v413_v42  ;;  %v407_v53 = vrot.slane %v406_v47, 2  ;;  %v392_v59 = vadd.f32 %v391_v50, %v390_v45  ;;  %v400_v62 = vrot.slane %v399_v56, 2 }
 0x1c8   :  { %v416_v54 = vrot.slane %v415_v49, 1  ;;  %v408_v55 = vadd.f32 %v407_v53, %v406_v47  ;;  %v393_v61 = vrot.slane %v392_v59, 2  ;;  %v401_v0 = vadd.f32 %v400_v62, %v399_v56  ;;  %v639_v56 = vld [vmem:[%s2983_s6 + $0x8] sm:$0xff] }
 0x1c9   :  { %v2608_v47 = vsub.s32 2, %v2502_v23 }
 0x1ca   :  { %v417_v57 = vadd.f32 %v416_v54, %v415_v49  ;;  %v409_v58 = vrot.slane %v408_v55, 1  ;;  %v394_v63 = vadd.f32 %v393_v61, %v392_v59  ;;  %v402_v2 = vrot.slane %v401_v0, 1  ;;  %v640_v59 = vld [vmem:[%s2983_s6 + $0x10] sm:$0xff]  ;;  %v1959_v61 = vld [vmem:[%s2984_s8] ss:$0 sm:$0xff] }
 0x1cb   :  { %v539_v50 = vrot.slane %v2523_v32, %v2608_v47 }
 0x1cc   :  { %2301 = vrcp.f32 %v417_v57  ;;  %v410_v60 = vadd.f32 %v409_v58, %v408_v55  ;;  %v395_v1 = vrot.slane %v394_v63, 1  ;;  %v403_v6 = vadd.f32 %v402_v2, %v401_v0 }
 0x1cd   :  { %v544_v55 = vrot.slane %v2523_v32, %v2611_v48  ;;  %v2639_v2 = vsub.s32 6, %v2502_v23 }
 0x1ce   :  { %2303 = vrcp.f32 %v410_v60  ;;  %v396_v5 = vadd.f32 %v395_v1, %v394_v63  ;;  %v638_v60 = vld [vmem:[%s2983_s6] sm:$0xff] }
 0x1d9   :  { %v2302_v4 = vpop.eup %2301 }
 0x1da   :  { %v421_v9 = vmul.f32 %v2302_v4, %v403_v6  ;;  %v649_v4 = vrot.slane %v2523_v32, %v2639_v2 }
 0x1db   :  { %v2304_v7 = vpop.eup %2303 }
 0x1dc   :  { %v419_v8 = vmul.f32 %v2304_v7, %v396_v5 }
 0x1de   :  { %v429_v11 = vsel %vm428_vm2, %v421_v9, %v419_v8 }
 0x1df   :  { %2125 = vmatmul.mubr.msk.f32.vlgmr.msra.gmra.mxu0 %vm60_vm0, %v429_v11 }
 0x1e0   :  { %2154 = vmatprep.mubr.msk.f32.mxu0 %vm2334_vm1, %v2333_v3 }
 0x29f   :  { %v514_v22 = vpop.f32.mrf.mxu0 }
 0x2a0   :  { %v515_v26 = vadd.f32 %v514_v22, %v425_v15  ;;  %v2648_v22 = vld [vmem:[%s2978_s5 + $0x38] sm:$0xff] }
 0x2a1   :  { %v2126_v27 = vpop.f32.mrf.mxu0 }
 0x2a2   :  { %v518_v28 = vadd.f32 %v515_v26, %v2463_v17  ;;  %v645_v17 = vld [vmem:[%s2983_s6 + $0x38] sm:$0xff]  ;;  %v2653_v26 = vld [vmem:[%s2978_s5 + $0x30] sm:$0xff]  ;;  %v2660_v27 = vld [vmem:[%s2978_s5 + $0x28] sm:$0xff] }
 0x2a3   :  { %2139 = vmatpush3.msra.mxu0 %v645_v17 }
 0x2a4   :  { %v520_v29 = vsel %vm519_vm3, %v518_v28, 0.0  ;;  %v525_v30 = vmul.f32 %v518_v28, %v518_v28  ;;  %2140 = vmatprep.subr.mxu0 %v2333_v3 }
 0x2a5   :  { %521 = vadd.xlane.f32.xlu0 %v520_v29  ;;  %2141 = vmatpush3.msra.mxu0 %v644_v34 }
 0x2a6   :  { %v526_v33 = vsel %vm519_vm3, %v525_v30, 0.0  ;;  %2142 = vmatprep.subr.mxu0 %v2333_v3 }
 0x2a7   :  { %527 = vadd.xlane.f32.xlu1 %v526_v33 }
 0x2b8   :  { %556 = vrot.lane.b32.xlu1 %v2431_v12, %s2338_s3  ;;  %v642_v12 = vld [vmem:[%s2983_s6 + $0x20] sm:$0xff] }
 0x2bb   :  { %558 = vrot.lane.b32.xlu0 %v2421_v10, %s2338_s3  ;;  %v643_v10 = vld [vmem:[%s2983_s6 + $0x28] sm:$0xff] }
 0x2bc   :  { %552 = vrot.lane.b32.xlu1 %v2455_v16, %s2338_s3  ;;  %2143 = vmatpush3.msra.mxu0 %v643_v10 }
 0x2bd   :  { %2144 = vmatprep.subr.mxu0 %v2333_v3 }
 0x2be   :  { %2145 = vmatpush3.msra.mxu0 %v642_v12 }
 0x2bf   :  { %554 = vrot.lane.b32.xlu0 %v2442_v14, %s2338_s3  ;;  %v641_v14 = vld [vmem:[%s2983_s6 + $0x18] sm:$0xff]  ;;  %2146 = vmatprep.subr.mxu0 %v2333_v3 }
 0x2c0   :  { %2147 = vmatpush3.msra.mxu0 %v641_v14  ;;  %v2674_v14 = vsub.s32 4, %v2502_v23 }
 0x2c1   :  { %2148 = vmatprep.subr.mxu0 %v2333_v3 }
 0x2c2   :  { %2149 = vmatpush3.msra.mxu0 %v640_v59 }
 0x2c3   :  { %2150 = vmatprep.subr.mxu0 %v2333_v3 }
 0x2c4   :  { %2151 = vmatpush3.msra.mxu0 %v639_v56 }
 0x2c5   :  { %2152 = vmatprep.subr.mxu0 %v2333_v3 }
 0x2c6   :  { %2153 = vmatpush3.msra.mxu0 %v638_v60 }
 0x2c7   :  { %2179 = vmatprep.subr.mxu0 %v2333_v3 }
 0x32e   :  { %v522_v16 = vpop.xlane.xlu0 %521 }
 0x32f   :  { %v524_v35 = vmul.f32 0.03125, %v522_v16  ;;  %v2677_v16 = vsub.s32 5, %v2502_v23  ;;  %v2698_v23 = vld [vmem:[%s2982_s7 + $0x8] sm:$0x7f] }
 0x330   :  { %v528_v36 = vpop.xlane.xlu1 %527 }
 0x331   :  { %v531_v37 = vmul.f32 %v524_v35, %v524_v35  ;;  %v529_v38 = vmul.f32 0.03125, %v528_v36  ;;  %v530_v49 = vsub.f32 %v518_v28, %v524_v35  ;;  %v2667_v28 = vld [vmem:[%s2978_s5 + $0x20] sm:$0xff]  ;;  %v743_v36 = vrot.slane %v2523_v32, %v2674_v14 }
 0x332   :  { %v559_v40 = vpop.permute.xlu0 %558 }
 0x333   :  { %v532_v42 = vsub.f32 %v529_v38, %v531_v37  ;;  %2128 = vmatpush3.msra.mxu1 %v559_v40  ;;  %v748_v40 = vrot.slane %v2523_v32, %v2677_v16  ;;  %v762_v32 = vrot.slane %v2698_v23, %v2505_v24 }
 0x334   :  { %v557_v43 = vpop.permute.xlu1 %556  ;;  %2129 = vmatprep.subr.mxu1 %v2333_v3 }
 0x335   :  { %v533_v44 = vadd.f32 1e-05, %v532_v42  ;;  %2130 = vmatpush3.msra.mxu1 %v557_v43 }
 0x336   :  { %2131 = vmatprep.subr.mxu1 %v2333_v3  ;;  %v555_v45 = vpop.permute.xlu0 %554 }
 0x337   :  { %2305 = vrsqrt.f32 %v533_v44  ;;  %2132 = vmatpush3.msra.mxu1 %v555_v45 }
 0x338   :  { %v553_v46 = vpop.permute.xlu1 %552  ;;  %2133 = vmatprep.subr.mxu1 %v2333_v3 }
 0x339   :  { %2134 = vmatpush3.msra.mxu1 %v553_v46 }
 0x33a   :  { %2157 = vmatprep.subr.mxu1 %v2333_v3 }
 0x344   :  { %v2306_v53 = vpop.eup %2305 }
 0x345   :  { %v535_v54 = vmul.f32 %v2306_v53, %v530_v49 }
 0x347   :  { %v540_v57 = vmul.f32 %v539_v50, %v535_v54 }
 0x349   :  { %v545_v58 = vadd.f32 %v544_v55, %v540_v57 }
 0x34b   :  { %2136 = vmatmul.mubr.msk.f32.vlgmr.msra.gmra.mxu1 %vm60_vm0, %v545_v58 }
 0x34c   :  { %2165 = vmatprep.mubr.msk.f32.mxu1 %vm2334_vm1, %v2333_v3  ;;  %2158 = vmatpush3.msra.mxu1 %v2648_v22 }
 0x34d   :  { %2159 = vmatprep.subr.mxu1 %v2333_v3 }
 0x34e   :  { %2160 = vmatpush3.msra.mxu1 %v2653_v26 }
 0x34f   :  { %2161 = vmatprep.subr.mxu1 %v2333_v3 }
 0x350   :  { %2162 = vmatpush3.msra.mxu1 %v2660_v27 }
 0x351   :  { %2163 = vmatprep.subr.mxu1 %v2333_v3 }
 0x352   :  { %2164 = vmatpush3.msra.mxu1 %v2667_v28 }
 0x353   :  { %2168 = vmatprep.subr.mxu1 %v2476_v18 }
 0x40b   :  { %v633_v62 = vpop.f32.mrf.mxu1 }
 0x40c   :  { %v634_v63 = vadd.f32 %v1959_v61, %v633_v62 }
 0x40d   :  { %v2137_v0 = vpop.f32.mrf.mxu1 }
 0x40e   :  { %v637_v1 = vmax.f32 %v634_v63, 0.0 }
 0x410   :  { %2155 = vmatmul.mubr.msk.f32.vlgmr.msra.gmra.mxu0 %vm650_vm4, %v637_v1 }
 0x411   :  { %2187 = vmatprep.mubr.msk.f32.mxu0 %vm2334_vm1, %v2333_v3 }
 0x4d0   :  { %v720_v5 = vpop.f32.mrf.mxu0 }
 0x4d1   :  { %v721_v6 = vadd.f32 %v720_v5, %v649_v4 }
 0x4d2   :  { %v2156_v7 = vpop.f32.mrf.mxu0 }
 0x4d3   :  { %v724_v8 = vadd.f32 %v721_v6, %v545_v58 }
 0x4d5   :  { %v725_v9 = vsel %vm519_vm3, %v724_v8, 0.0  ;;  %v729_v11 = vmul.f32 %v724_v8, %v724_v8 }
 0x4d6   :  { %726 = vadd.xlane.f32.xlu0 %v725_v9 }
 0x4d7   :  { %v730_v15 = vsel %vm519_vm3, %v729_v11, 0.0 }
 0x4d8   :  { %731 = vadd.xlane.f32.xlu1 %v730_v15 }
 0x55f   :  { %v727_v29 = vpop.xlane.xlu0 %726 }
 0x560   :  { %v728_v30 = vmul.f32 0.03125, %v727_v29 }
 0x561   :  { %v732_v33 = vpop.xlane.xlu1 %731 }
 0x562   :  { %v735_v17 = vmul.f32 %v728_v30, %v728_v30  ;;  %v733_v34 = vmul.f32 0.03125, %v732_v33  ;;  %v734_v35 = vsub.f32 %v724_v8, %v728_v30 }
 0x564   :  { %v736_v10 = vsub.f32 %v733_v34, %v735_v17 }
 0x566   :  { %v737_v12 = vadd.f32 1e-05, %v736_v10 }
 0x568   :  { %2307 = vrsqrt.f32 %v737_v12 }
 0x575   :  { %v2308_v37 = vpop.eup %2307 }
 0x576   :  { %v739_v38 = vmul.f32 %v2308_v37, %v734_v35 }
 0x578   :  { %v744_v42 = vmul.f32 %v743_v36, %v739_v38 }
 0x57a   :  { %v2683_v43 = vadd.f32 %v748_v40, %v744_v42 }
 0x57c   :  { %2166 = vmatmul.mubr.msk.f32.vlgmr.msra.gmra.mxu1 %vm60_vm0, %v2683_v43 }
 0x57d   :  { %2169 = vmatpush3.msra.mxu1 %v2476_v18 }
 0x57e   :  { %2170 = vmatprep.subr.mxu1 %v2483_v19 }
 0x57f   :  { %2171 = vmatpush3.msra.mxu1 %v2483_v19 }
 0x580   :  { %2172 = vmatprep.subr.mxu1 %v2490_v20 }
 0x581   :  { %2173 = vmatpush3.msra.mxu1 %v2490_v20 }
 0x582   :  { %2174 = vmatprep.subr.mxu1 %v2497_v21 }
 0x583   :  { %2175 = vmatpush3.msra.mxu1 %v2497_v21 }
 0x584   :  { %2190 = vmatprep.subr.mxu1 %v2333_v3 }
 0x63c   :  { %v832_v44 = vpop.f32.mrf.mxu1 }
 0x63d   :  { %v833_v45 = vadd.f32 %v832_v44, %v762_v32  ;;  %v57_v32 = vrot.slane %v2510_v25, %v2568_v13 }
 0x63e   :  { %v2167_v46 = vpop.f32.mrf.mxu1 }
 0x63f   :  { %v843_v49 = vrot.slane %v833_v45, %v2534_v41  ;;  %v2734_v44 = vadd.f32 %v2530_v39, %v57_v32  ;;  %v2737_v46 = vadd.f32 %v2518_v31, %v57_v32 }
 0x641   :  { %v844_v50 = vcombine.high %v843_v49, %v843_v49  ;;  %v851_v53 = vrot.slane %v843_v49, %v2534_v41 }
 0x643   :  { %v862_v54 = vrot.slane %v851_v53, %v2505_v24  ;;  %v858_v55 = vrot.slane %v844_v50, %v2534_v41 }
 0x645   :  { %867 = vrot.lane.b32.xlu0 %v862_v54, %s2337_s4  ;;  %v866_v57 = vrot.slane %v858_v55, %v2505_v24 }
 0x647   :  { %869 = vrot.lane.b32.xlu1 %v866_v57, %s2337_s4 }
 0x6b7   :  { %v868_v58 = vpop.permute.xlu0 %867 }
 0x6b8   :  { %v873_v59 = vmul.f32 %v868_v58, %v2542_v51 }
 0x6b9   :  { %v870_v56 = vpop.permute.xlu1 %869 }
 0x6ba   :  { %v874_v60 = vmul.f32 %v870_v56, %v2544_v52  ;;  %877 = vrot.lane.b32.xlu0 %v873_v59, %s2335_s29 }
 0x6bc   :  { %879 = vrot.lane.b32.xlu1 %v874_v60, %s2335_s29 }
 0x6be   :  { %1031 = vrot.lane.b32.xlu0 %v2648_v22, %s2335_s29 }
 0x6c0   :  { %1029 = vrot.lane.b32.xlu1 %v2653_v26, %s2335_s29 }
 0x6c2   :  { %1027 = vrot.lane.b32.xlu0 %v2660_v27, %s2335_s29 }
 0x6c4   :  { %1025 = vrot.lane.b32.xlu1 %v2667_v28, %s2335_s29 }
 0x72c   :  { %v878_v61 = vpop.permute.xlu0 %877 }
 0x72d   :  { %2176 = vmatprep.mubr.msk.f32.mxu1 %vm60_vm0, %v878_v61 }
 0x72e   :  { %v880_v62 = vpop.permute.xlu1 %879 }
 0x72f   :  { %2177 = vmatmul.mubr.msk.f32.vlgmr.msra.gmra.mxu1 %vm60_vm0, %v880_v62 }
 0x730   :  { %2198 = vmatprep.mubr.msk.f32.mxu1 %vm2334_vm1, %v2333_v3  ;;  %v1032_v63 = vpop.permute.xlu0 %1031 }
 0x731   :  { %2180 = vmatpush3.msra.mxu0 %v1032_v63 }
 0x732   :  { %v1030_v0 = vpop.permute.xlu1 %1029  ;;  %2181 = vmatprep.subr.mxu0 %v2333_v3 }
 0x733   :  { %2182 = vmatpush3.msra.mxu0 %v1030_v0 }
 0x734   :  { %v1028_v1 = vpop.permute.xlu0 %1027  ;;  %2183 = vmatprep.subr.mxu0 %v2333_v3 }
 0x735   :  { %2184 = vmatpush3.msra.mxu0 %v1028_v1 }
 0x736   :  { %v1026_v4 = vpop.permute.xlu1 %1025  ;;  %2185 = vmatprep.subr.mxu0 %v2333_v3 }
 0x737   :  { %2186 = vmatpush3.msra.mxu0 %v1026_v4 }
 0x738   :  { %2201 = vmatprep.subr.mxu0 %v2333_v3 }
 0x7ef   :  { %v2178_v5 = vpop.f32.mrf.mxu1 }
 0x7f0   :  { %v967_v6 = vsel %vm60_vm0, %v2178_v5, -inf }
 0x7f1   :  { %v968_v7 = vrot.slane %v967_v6, 4  ;;  %v951_v8 = vpop.f32.mrf.mxu1 }
 0x7f2   :  { %v960_v9 = vsel %vm60_vm0, %v951_v8, -inf }
 0x7f3   :  { %v969_v11 = vmax.f32 %v967_v6, %v968_v7  ;;  %v961_v15 = vrot.slane %v960_v9, 4 }
 0x7f5   :  { %v970_v29 = vrot.slane %v969_v11, 2  ;;  %v962_v30 = vmax.f32 %v960_v9, %v961_v15 }
 0x7f7   :  { %v971_v33 = vmax.f32 %v969_v11, %v970_v29  ;;  %v963_v17 = vrot.slane %v962_v30, 2 }
 0x7f9   :  { %v972_v34 = vrot.slane %v971_v33, 1  ;;  %v964_v10 = vmax.f32 %v962_v30, %v963_v17 }
 0x7fb   :  { %v973_v12 = vmax.f32 %v971_v33, %v972_v34  ;;  %v965_v35 = vrot.slane %v964_v10, 1 }
 0x7fd   :  { %v975_v36 = vsub.f32 %v2178_v5, %v973_v12  ;;  %v966_v37 = vmax.f32 %v964_v10, %v965_v35 }
 0x7ff   :  { %v978_v38 = vmul.f32 1.442695, %v975_v36  ;;  %v974_v40 = vsub.f32 %v951_v8, %v966_v37 }
 0x801   :  { %2309 = vpow2.f32 %v978_v38  ;;  %v976_v42 = vmul.f32 1.442695, %v974_v40  ;;  %v1017_v38 = vrot.slane %v2698_v23, %v2568_v13 }
 0x803   :  { %2311 = vpow2.f32 %v976_v42 }
 0x80e   :  { %v2310_v45 = vpop.eup %2309 }
 0x80f   :  { %v981_v49 = vmul.f32 %v2310_v45, %v2734_v44  ;;  %v1003_v50 = vsel %vm60_vm0, %v2310_v45, 0.0 }
 0x810   :  { %v2312_v53 = vpop.eup %2311  ;;  %v1004_v54 = vrot.slane %v1003_v50, 4 }
 0x811   :  { %v980_v55 = vmul.f32 %v2312_v53, %v2737_v46  ;;  %v996_v57 = vsel %vm60_vm0, %v2312_v53, 0.0  ;;  %v989_v39 = vsel %vm60_vm0, %v981_v49, 0.0 }
 0x812   :  { %v1005_v58 = vadd.f32 %v1004_v54, %v1003_v50  ;;  %v997_v59 = vrot.slane %v996_v57, 4  ;;  %v990_v63 = vrot.slane %v989_v39, 4  ;;  %v1981_v54 = vld [vmem:[%s2983_s6 + $0x78] sm:$0xff] }
 0x813   :  { %v982_v25 = vsel %vm60_vm0, %v980_v55, 0.0  ;;  %v1980_v55 = vld [vmem:[%s2983_s6 + $0x70] sm:$0xff] }
 0x814   :  { %v1006_v56 = vrot.slane %v1005_v58, 2  ;;  %v998_v60 = vadd.f32 %v997_v59, %v996_v57  ;;  %v983_v62 = vrot.slane %v982_v25, 4  ;;  %v991_v7 = vadd.f32 %v990_v63, %v989_v39 }
 0x816   :  { %v1007_v31 = vadd.f32 %v1006_v56, %v1005_v58  ;;  %v999_v61 = vrot.slane %v998_v60, 2  ;;  %v984_v6 = vadd.f32 %v983_v62, %v982_v25  ;;  %v992_v11 = vrot.slane %v991_v7, 2 }
 0x818   :  { %v1008_v0 = vrot.slane %v1007_v31, 1  ;;  %v1000_v1 = vadd.f32 %v999_v61, %v998_v60  ;;  %v985_v9 = vrot.slane %v984_v6, 2  ;;  %v993_v29 = vadd.f32 %v992_v11, %v991_v7  ;;  %v1974_v11 = vld [vmem:[%s2983_s6 + $0x40] sm:$0xff] }
 0x81a   :  { %v1009_v4 = vadd.f32 %v1008_v0, %v1007_v31  ;;  %v1001_v5 = vrot.slane %v1000_v1, 1  ;;  %v986_v15 = vadd.f32 %v985_v9, %v984_v6  ;;  %v994_v33 = vrot.slane %v993_v29, 1  ;;  %v1975_v9 = vld [vmem:[%s2983_s6 + $0x48] sm:$0xff] }
 0x81b   :  { %v1128_v0 = vrot.slane %v2698_v23, %v2608_v47 }
 0x81c   :  { %2313 = vrcp.f32 %v1009_v4  ;;  %v1002_v8 = vadd.f32 %v1001_v5, %v1000_v1  ;;  %v987_v30 = vrot.slane %v986_v15, 1  ;;  %v995_v10 = vadd.f32 %v994_v33, %v993_v29 }
 0x81d   :  { %v1133_v5 = vrot.slane %v2698_v23, %v2611_v48 }
 0x81e   :  { %2315 = vrcp.f32 %v1002_v8  ;;  %v988_v34 = vadd.f32 %v987_v30, %v986_v15  ;;  %v1976_v8 = vld [vmem:[%s2983_s6 + $0x50] sm:$0xff]  ;;  %v1972_v15 = vld [vmem:[%s2984_s8 + $0x1] ss:$0 sm:$0xff] }
 0x829   :  { %v2314_v17 = vpop.eup %2313 }
 0x82a   :  { %v1013_v36 = vmul.f32 %v2314_v17, %v995_v10 }
 0x82b   :  { %v2316_v12 = vpop.eup %2315 }
 0x82c   :  { %v1011_v35 = vmul.f32 %v2316_v12, %v988_v34  ;;  %v1239_v34 = vrot.slane %v2698_v23, %v2639_v2 }
 0x82e   :  { %v1020_v37 = vsel %vm428_vm2, %v1013_v36, %v1011_v35 }
 0x82f   :  { %2188 = vmatmul.mubr.msk.f32.vlgmr.msra.gmra.mxu0 %vm60_vm0, %v1020_v37 }
 0x830   :  { %2217 = vmatprep.mubr.msk.f32.mxu0 %vm2334_vm1, %v2333_v3  ;;  %2202 = vmatpush3.msra.mxu0 %v1981_v54 }
 0x831   :  { %2203 = vmatprep.subr.mxu0 %v2333_v3 }
 0x832   :  { %2204 = vmatpush3.msra.mxu0 %v1980_v55 }
 0x833   :  { %2205 = vmatprep.subr.mxu0 %v2333_v3 }
 0x8ef   :  { %v1105_v40 = vpop.f32.mrf.mxu0 }
 0x8f0   :  { %v1106_v42 = vadd.f32 %v1105_v40, %v1017_v38 }
 0x8f1   :  { %v2189_v32 = vpop.f32.mrf.mxu0 }
 0x8f2   :  { %v1109_v45 = vadd.f32 %v1106_v42, %v2683_v43  ;;  %v2818_v42 = vld [vmem:[%s2978_s5 + $0x58] sm:$0xff]  ;;  %v2823_v32 = vld [vmem:[%s2978_s5 + $0x50] sm:$0xff] }
 0x8f4   :  { %v1110_v49 = vsel %vm519_vm3, %v1109_v45, 0.0  ;;  %v1114_v50 = vmul.f32 %v1109_v45, %v1109_v45 }
 0x8f5   :  { %1111 = vadd.xlane.f32.xlu0 %v1110_v49  ;;  %v2837_v49 = vld [vmem:[%s2978_s5 + $0x40] sm:$0xff] }
 0x8f6   :  { %v1115_v53 = vsel %vm519_vm3, %v1114_v50, 0.0 }
 0x8f7   :  { %1116 = vadd.xlane.f32.xlu1 %v1115_v53 }
 0x908   :  { %1145 = vrot.lane.b32.xlu1 %v2653_v26, %s2338_s3  ;;  %v1978_v26 = vld [vmem:[%s2983_s6 + $0x60] sm:$0xff] }
 0x90b   :  { %1147 = vrot.lane.b32.xlu0 %v2648_v22, %s2338_s3  ;;  %v1979_v22 = vld [vmem:[%s2983_s6 + $0x68] sm:$0xff] }
 0x90c   :  { %1141 = vrot.lane.b32.xlu1 %v2667_v28, %s2338_s3  ;;  %2206 = vmatpush3.msra.mxu0 %v1979_v22 }
 0x90d   :  { %2207 = vmatprep.subr.mxu0 %v2333_v3 }
 0x90e   :  { %2208 = vmatpush3.msra.mxu0 %v1978_v26 }
 0x90f   :  { %1143 = vrot.lane.b32.xlu0 %v2660_v27, %s2338_s3  ;;  %v1977_v27 = vld [vmem:[%s2983_s6 + $0x58] sm:$0xff]  ;;  %2209 = vmatprep.subr.mxu0 %v2333_v3 }
 0x910   :  { %2210 = vmatpush3.msra.mxu0 %v1977_v27 }
 0x911   :  { %2211 = vmatprep.subr.mxu0 %v2333_v3 }
 0x912   :  { %2212 = vmatpush3.msra.mxu0 %v1976_v8 }
 0x913   :  { %2213 = vmatprep.subr.mxu0 %v2333_v3 }
 0x914   :  { %2214 = vmatpush3.msra.mxu0 %v1975_v9 }
 0x915   :  { %2215 = vmatprep.subr.mxu0 %v2333_v3 }
 0x916   :  { %2216 = vmatpush3.msra.mxu0 %v1974_v11 }
 0x917   :  { %2242 = vmatprep.subr.mxu0 %v2333_v3 }
 0x97e   :  { %v1112_v28 = vpop.xlane.xlu0 %1111 }
 0x97f   :  { %v1113_v57 = vmul.f32 0.03125, %v1112_v28 }
 0x980   :  { %v1117_v58 = vpop.xlane.xlu1 %1116 }
 0x981   :  { %v1120_v59 = vmul.f32 %v1113_v57, %v1113_v57  ;;  %v1118_v25 = vmul.f32 0.03125, %v1117_v58  ;;  %v1119_v63 = vsub.f32 %v1109_v45, %v1113_v57  ;;  %v2830_v45 = vld [vmem:[%s2978_s5 + $0x48] sm:$0xff]  ;;  %v1332_v57 = vrot.slane %v2698_v23, %v2674_v14 }
 0x982   :  { %v1148_v39 = vpop.permute.xlu0 %1147 }
 0x983   :  { %v1121_v56 = vsub.f32 %v1118_v25, %v1120_v59  ;;  %2191 = vmatpush3.msra.mxu1 %v1148_v39  ;;  %v1337_v25 = vrot.slane %v2698_v23, %v2677_v16  ;;  %v2862_v23 = vld [vmem:[%s2982_s7 + $0x10] sm:$0x7f] }
 0x984   :  { %v1146_v60 = vpop.permute.xlu1 %1145  ;;  %2192 = vmatprep.subr.mxu1 %v2333_v3 }
 0x985   :  { %v1122_v31 = vadd.f32 1e-05, %v1121_v56  ;;  %2193 = vmatpush3.msra.mxu1 %v1146_v60 }
 0x986   :  { %2194 = vmatprep.subr.mxu1 %v2333_v3  ;;  %v1144_v61 = vpop.permute.xlu0 %1143 }
 0x987   :  { %2317 = vrsqrt.f32 %v1122_v31  ;;  %2195 = vmatpush3.msra.mxu1 %v1144_v61 }
 0x988   :  { %v1142_v62 = vpop.permute.xlu1 %1141  ;;  %2196 = vmatprep.subr.mxu1 %v2333_v3 }
 0x989   :  { %2197 = vmatpush3.msra.mxu1 %v1142_v62 }
 0x98a   :  { %2220 = vmatprep.subr.mxu1 %v2333_v3 }
 0x994   :  { %v2318_v1 = vpop.eup %2317 }
 0x995   :  { %v1124_v4 = vmul.f32 %v2318_v1, %v1119_v63 }
 0x997   :  { %v1129_v6 = vmul.f32 %v1128_v0, %v1124_v4 }
 0x999   :  { %v1134_v7 = vadd.f32 %v1133_v5, %v1129_v6 }
 0x99b   :  { %2199 = vmatmul.mubr.msk.f32.vlgmr.msra.gmra.mxu1 %vm60_vm0, %v1134_v7 }
 0x99c   :  { %2228 = vmatprep.mubr.msk.f32.mxu1 %vm2334_vm1, %v2333_v3  ;;  %2221 = vmatpush3.msra.mxu1 %v2818_v42 }
 0x99d   :  { %2222 = vmatprep.subr.mxu1 %v2333_v3 }
 0x99e   :  { %2223 = vmatpush3.msra.mxu1 %v2823_v32 }
 0x99f   :  { %2224 = vmatprep.subr.mxu1 %v2333_v3 }
 0x9a0   :  { %2225 = vmatpush3.msra.mxu1 %v2830_v45 }
 0x9a1   :  { %2226 = vmatprep.subr.mxu1 %v2333_v3 }
 0x9a2   :  { %2227 = vmatpush3.msra.mxu1 %v2837_v49 }
 0x9a3   :  { %2231 = vmatprep.subr.mxu1 %v2476_v18 }
 0xa5b   :  { %v1222_v29 = vpop.f32.mrf.mxu1 }
 0xa5c   :  { %v1223_v30 = vadd.f32 %v1972_v15, %v1222_v29 }
 0xa5d   :  { %v2200_v33 = vpop.f32.mrf.mxu1 }
 0xa5e   :  { %v1226_v17 = vmax.f32 %v1223_v30, 0.0 }
 0xa60   :  { %2218 = vmatmul.mubr.msk.f32.vlgmr.msra.gmra.mxu0 %vm650_vm4, %v1226_v17 }
 0xa61   :  { %2250 = vmatprep.mubr.msk.f32.mxu0 %vm2334_vm1, %v2333_v3 }
 0xb20   :  { %v1309_v10 = vpop.f32.mrf.mxu0 }
 0xb21   :  { %v1310_v12 = vadd.f32 %v1309_v10, %v1239_v34 }
 0xb22   :  { %v2219_v35 = vpop.f32.mrf.mxu0 }
 0xb23   :  { %v1313_v36 = vadd.f32 %v1310_v12, %v1134_v7 }
 0xb25   :  { %v1314_v37 = vsel %vm519_vm3, %v1313_v36, 0.0  ;;  %v1318_v38 = vmul.f32 %v1313_v36, %v1313_v36 }
 0xb26   :  { %1315 = vadd.xlane.f32.xlu0 %v1314_v37 }
 0xb27   :  { %v1319_v40 = vsel %vm519_vm3, %v1318_v38, 0.0 }
 0xb28   :  { %1320 = vadd.xlane.f32.xlu1 %v1319_v40 }
 0xbaf   :  { %v1316_v50 = vpop.xlane.xlu0 %1315 }
 0xbb0   :  { %v1317_v53 = vmul.f32 0.03125, %v1316_v50 }
 0xbb1   :  { %v1321_v54 = vpop.xlane.xlu1 %1320 }
 0xbb2   :  { %v1324_v55 = vmul.f32 %v1317_v53, %v1317_v53  ;;  %v1322_v22 = vmul.f32 0.03125, %v1321_v54  ;;  %v1323_v28 = vsub.f32 %v1313_v36, %v1317_v53 }
 0xbb4   :  { %v1325_v26 = vsub.f32 %v1322_v22, %v1324_v55 }
 0xbb6   :  { %v1326_v27 = vadd.f32 1e-05, %v1325_v26 }
 0xbb8   :  { %2319 = vrsqrt.f32 %v1326_v27 }
 0xbc5   :  { %v2320_v58 = vpop.eup %2319 }
 0xbc6   :  { %v1328_v59 = vmul.f32 %v2320_v58, %v1323_v28 }
 0xbc8   :  { %v1333_v39 = vmul.f32 %v1332_v57, %v1328_v59 }
 0xbca   :  { %v2847_v56 = vadd.f32 %v1337_v25, %v1333_v39 }
 0xbcc   :  { %2229 = vmatmul.mubr.msk.f32.vlgmr.msra.gmra.mxu1 %vm60_vm0, %v2847_v56 }
 0xbcd   :  { %2232 = vmatpush3.msra.mxu1 %v2476_v18  ;;  %v1351_v18 = vrot.slane %v2862_v23, %v2505_v24 }
 0xbce   :  { %2233 = vmatprep.subr.mxu1 %v2483_v19 }
 0xbcf   :  { %2234 = vmatpush3.msra.mxu1 %v2483_v19 }
 0xbd0   :  { %2235 = vmatprep.subr.mxu1 %v2490_v20 }
 0xbd1   :  { %2236 = vmatpush3.msra.mxu1 %v2490_v20 }
 0xbd2   :  { %2237 = vmatprep.subr.mxu1 %v2497_v21 }
 0xbd3   :  { %2238 = vmatpush3.msra.mxu1 %v2497_v21 }
 0xbd4   :  { %2253 = vmatprep.subr.mxu1 %v2333_v3 }
 0xc8c   :  { %v1421_v60 = vpop.f32.mrf.mxu1 }
 0xc8d   :  { %v1422_v19 = vadd.f32 %v1421_v60, %v1351_v18 }
 0xc8e   :  { %v2230_v31 = vpop.f32.mrf.mxu1 }
 0xc8f   :  { %v1432_v61 = vrot.slane %v1422_v19, %v2534_v41 }
 0xc91   :  { %v1433_v20 = vcombine.high %v1432_v61, %v1432_v61  ;;  %v1440_v62 = vrot.slane %v1432_v61, %v2534_v41 }
 0xc93   :  { %v1451_v21 = vrot.slane %v1440_v62, %v2505_v24  ;;  %v1447_v63 = vrot.slane %v1433_v20, %v2534_v41 }
 0xc95   :  { %1456 = vrot.lane.b32.xlu0 %v1451_v21, %s2338_s3  ;;  %v1455_v0 = vrot.slane %v1447_v63, %v2505_v24 }
 0xc97   :  { %1458 = vrot.lane.b32.xlu1 %v1455_v0, %s2338_s3 }
 0xd07   :  { %v1457_v1 = vpop.permute.xlu0 %1456 }
 0xd08   :  { %v1462_v4 = vmul.f32 %v1457_v1, %v2542_v51 }
 0xd09   :  { %v1459_v5 = vpop.permute.xlu1 %1458 }
 0xd0a   :  { %v1463_v6 = vmul.f32 %v1459_v5, %v2544_v52  ;;  %1466 = vrot.lane.b32.xlu0 %v1462_v4, %s2338_s3 }
 0xd0c   :  { %1468 = vrot.lane.b32.xlu1 %v1463_v6, %s2338_s3 }
 0xd0e   :  { %1571 = vrot.lane.b32.xlu0 %v2737_v46, %s2335_s29 }
 0xd10   :  { %1573 = vrot.lane.b32.xlu1 %v2734_v44, %s2335_s29 }
 0xd12   :  { %1628 = vrot.lane.b32.xlu0 %v2818_v42, %s2335_s29 }
 0xd14   :  { %1626 = vrot.lane.b32.xlu1 %v2823_v32, %s2335_s29 }
 0xd16   :  { %1624 = vrot.lane.b32.xlu0 %v2830_v45, %s2335_s29 }
 0xd18   :  { %1622 = vrot.lane.b32.xlu1 %v2837_v49, %s2335_s29 }
 0xd7c   :  { %v1467_v24 = vpop.permute.xlu0 %1466 }
 0xd7d   :  { %2239 = vmatprep.mubr.msk.f32.mxu1 %vm60_vm0, %v1467_v24 }
 0xd7e   :  { %v1469_v41 = vpop.permute.xlu1 %1468 }
 0xd7f   :  { %2240 = vmatmul.mubr.msk.f32.vlgmr.msra.gmra.mxu1 %vm60_vm0, %v1469_v41 }
 0xd80   :  { %2261 = vmatprep.mubr.msk.f32.mxu1 %vm2334_vm1, %v2333_v3  ;;  %v1572_v51 = vpop.permute.xlu0 %1571 }
 0xd82   :  { %v1574_v52 = vpop.permute.xlu1 %1573 }
 0xd84   :  { %v1629_v44 = vpop.permute.xlu0 %1628 }
 0xd85   :  { %2243 = vmatpush3.msra.mxu0 %v1629_v44 }
 0xd86   :  { %v1627_v46 = vpop.permute.xlu1 %1626  ;;  %2244 = vmatprep.subr.mxu0 %v2333_v3 }
 0xd87   :  { %2245 = vmatpush3.msra.mxu0 %v1627_v46 }
 0xd88   :  { %v1625_v7 = vpop.permute.xlu0 %1624  ;;  %2246 = vmatprep.subr.mxu0 %v2333_v3 }
 0xd89   :  { %2247 = vmatpush3.msra.mxu0 %v1625_v7 }
 0xd8a   :  { %v1623_v8 = vpop.permute.xlu1 %1622  ;;  %2248 = vmatprep.subr.mxu0 %v2333_v3 }
 0xd8b   :  { %2249 = vmatpush3.msra.mxu0 %v1623_v8 }
 0xd8c   :  { %2264 = vmatprep.subr.mxu0 %v2333_v3 }
 0xe3f   :  { %v2241_v9 = vpop.f32.mrf.mxu1 }
 0xe40   :  { %v1556_v11 = vsel %vm60_vm0, %v2241_v9, -inf }
 0xe41   :  { %v1557_v15 = vrot.slane %v1556_v11, 4  ;;  %v1540_v29 = vpop.f32.mrf.mxu1 }
 0xe42   :  { %v1549_v30 = vsel %vm60_vm0, %v1540_v29, -inf }
 0xe43   :  { %v1558_v33 = vmax.f32 %v1556_v11, %v1557_v15  ;;  %v1550_v17 = vrot.slane %v1549_v30, 4 }
 0xe45   :  { %v1559_v34 = vrot.slane %v1558_v33, 2  ;;  %v1551_v10 = vmax.f32 %v1549_v30, %v1550_v17 }
 0xe47   :  { %v1560_v12 = vmax.f32 %v1558_v33, %v1559_v34  ;;  %v1552_v35 = vrot.slane %v1551_v10, 2  ;;  %v1614_v34 = vrot.slane %v2862_v23, %v2568_v13  ;;  %v2002_v13 = vld [vmem:[%s2983_s6 + $0xb8] sm:$0xff] }
 0xe49   :  { %v1561_v36 = vrot.slane %v1560_v12, 1  ;;  %v1553_v37 = vmax.f32 %v1551_v10, %v1552_v35 }
 0xe4b   :  { %v1562_v38 = vmax.f32 %v1560_v12, %v1561_v36  ;;  %v1554_v40 = vrot.slane %v1553_v37, 1 }
 0xe4d   :  { %v1564_v50 = vsub.f32 %v2241_v9, %v1562_v38  ;;  %v1555_v53 = vmax.f32 %v1553_v37, %v1554_v40 }
 0xe4f   :  { %v1567_v54 = vmul.f32 1.442695, %v1564_v50  ;;  %v1563_v55 = vsub.f32 %v1540_v29, %v1555_v53  ;;  %v2001_v50 = vld [vmem:[%s2983_s6 + $0xb0] sm:$0xff] }
 0xe51   :  { %2321 = vpow2.f32 %v1567_v54  ;;  %v1565_v22 = vmul.f32 1.442695, %v1563_v55 }
 0xe53   :  { %2323 = vpow2.f32 %v1565_v22 }
 0xe5e   :  { %v2322_v26 = vpop.eup %2321 }
 0xe5f   :  { %v1578_v27 = vmul.f32 %v2322_v26, %v1574_v52  ;;  %v1600_v28 = vsel %vm60_vm0, %v2322_v26, 0.0 }
 0xe60   :  { %v2324_v57 = vpop.eup %2323  ;;  %v1601_v58 = vrot.slane %v1600_v28, 4 }
 0xe61   :  { %v1577_v59 = vmul.f32 %v2324_v57, %v1572_v51  ;;  %v1593_v25 = vsel %vm60_vm0, %v2324_v57, 0.0  ;;  %v1586_v19 = vsel %vm60_vm0, %v1578_v27, 0.0 }
 0xe62   :  { %v1602_v39 = vadd.f32 %v1601_v58, %v1600_v28  ;;  %v1594_v18 = vrot.slane %v1593_v25, 4  ;;  %v1587_v63 = vrot.slane %v1586_v19, 4 }
 0xe63   :  { %v1579_v60 = vsel %vm60_vm0, %v1577_v59, 0.0 }
 0xe64   :  { %v1603_v31 = vrot.slane %v1602_v39, 2  ;;  %v1595_v61 = vadd.f32 %v1594_v18, %v1593_v25  ;;  %v1580_v21 = vrot.slane %v1579_v60, 4  ;;  %v1588_v24 = vadd.f32 %v1587_v63, %v1586_v19 }
 0xe65   :  { %v1730_v19 = vrot.slane %v2862_v23, %v2611_v48  ;;  %v1995_v48 = vld [vmem:[%s2983_s6 + $0x80] sm:$0xff] }
 0xe66   :  { %v1604_v20 = vadd.f32 %v1603_v31, %v1602_v39  ;;  %v1596_v62 = vrot.slane %v1595_v61, 2  ;;  %v1581_v6 = vadd.f32 %v1580_v21, %v1579_v60  ;;  %v1589_v52 = vrot.slane %v1588_v24, 2 }
 0xe67   :  { %v1725_v39 = vrot.slane %v2862_v23, %v2608_v47  ;;  %v1996_v47 = vld [vmem:[%s2983_s6 + $0x88] sm:$0xff] }
 0xe68   :  { %v1605_v0 = vrot.slane %v1604_v20, 1  ;;  %v1597_v1 = vadd.f32 %v1596_v62, %v1595_v61  ;;  %v1582_v51 = vrot.slane %v1581_v6, 2  ;;  %v1590_v46 = vadd.f32 %v1589_v52, %v1588_v24  ;;  %v1993_v62 = vld [vmem:[%s2984_s8 + $0x2] ss:$0 sm:$0xff] }
 0xe6a   :  { %v1606_v4 = vadd.f32 %v1605_v0, %v1604_v20  ;;  %v1598_v5 = vrot.slane %v1597_v1, 1  ;;  %v1583_v44 = vadd.f32 %v1582_v51, %v1581_v6  ;;  %v1591_v8 = vrot.slane %v1590_v46, 1  ;;  %v1997_v20 = vld [vmem:[%s2983_s6 + $0x90] sm:$0xff] }
 0xe6c   :  { %2325 = vrcp.f32 %v1606_v4  ;;  %v1599_v41 = vadd.f32 %v1598_v5, %v1597_v1  ;;  %v1584_v7 = vrot.slane %v1583_v44, 1  ;;  %v1592_v15 = vadd.f32 %v1591_v8, %v1590_v46 }
 0xe6d   :  { %v1836_v4 = vrot.slane %v2862_v23, %v2639_v2 }
 0xe6e   :  { %2327 = vrcp.f32 %v1599_v41  ;;  %v1585_v11 = vadd.f32 %v1584_v7, %v1583_v44 }
 0xe79   :  { %v2326_v9 = vpop.eup %2325 }
 0xe7a   :  { %v1610_v33 = vmul.f32 %v2326_v9, %v1592_v15 }
 0xe7b   :  { %v2328_v29 = vpop.eup %2327 }
 0xe7c   :  { %v1608_v30 = vmul.f32 %v2328_v29, %v1585_v11  ;;  %v1929_v29 = vrot.slane %v2862_v23, %v2674_v14 }
 0xe7e   :  { %v1617_v17 = vsel %vm428_vm2, %v1610_v33, %v1608_v30  ;;  %v1934_v33 = vrot.slane %v2862_v23, %v2677_v16 }
 0xe7f   :  { %2251 = vmatmul.mubr.msk.f32.vlgmr.msra.gmra.mxu0 %vm60_vm0, %v1617_v17 }
 0xe80   :  { %2280 = vmatprep.mubr.msk.f32.mxu0 %vm2334_vm1, %v2333_v3  ;;  %2265 = vmatpush3.msra.mxu0 %v2002_v13 }
 0xe81   :  { %2266 = vmatprep.subr.mxu0 %v2333_v3 }
 0xe82   :  { %2267 = vmatpush3.msra.mxu0 %v2001_v50 }
 0xe83   :  { %2268 = vmatprep.subr.mxu0 %v2333_v3 }
 0xf3f   :  { %v1702_v10 = vpop.f32.mrf.mxu0 }
 0xf40   :  { %v1703_v12 = vadd.f32 %v1702_v10, %v1614_v34  ;;  %v1936_v10 = vrot.slane %v2847_v56, 6 }
 0xf41   :  { %v2252_v35 = vpop.f32.mrf.mxu0 }
 0xf42   :  { %v1706_v36 = vadd.f32 %v1703_v12, %v2847_v56 }
 0xf44   :  { %v1707_v37 = vsel %vm519_vm3, %v1706_v36, 0.0  ;;  %v1711_v38 = vmul.f32 %v1706_v36, %v1706_v36 }
 0xf45   :  { %1708 = vadd.xlane.f32.xlu0 %v1707_v37 }
 0xf46   :  { %v1712_v40 = vsel %vm519_vm3, %v1711_v38, 0.0 }
 0xf47   :  { %1713 = vadd.xlane.f32.xlu1 %v1712_v40 }
 0xf58   :  { %1742 = vrot.lane.b32.xlu1 %v2823_v32, %s2338_s3  ;;  %v1999_v32 = vld [vmem:[%s2983_s6 + $0xa0] sm:$0xff] }
 0xf5b   :  { %1744 = vrot.lane.b32.xlu0 %v2818_v42, %s2338_s3  ;;  %v2000_v42 = vld [vmem:[%s2983_s6 + $0xa8] sm:$0xff] }
 0xf5c   :  { %1738 = vrot.lane.b32.xlu1 %v2837_v49, %s2338_s3  ;;  %2269 = vmatpush3.msra.mxu0 %v2000_v42 }
 0xf5d   :  { %2270 = vmatprep.subr.mxu0 %v2333_v3 }
 0xf5e   :  { %2271 = vmatpush3.msra.mxu0 %v1999_v32 }
 0xf5f   :  { %1740 = vrot.lane.b32.xlu0 %v2830_v45, %s2338_s3  ;;  %v1998_v45 = vld [vmem:[%s2983_s6 + $0x98] sm:$0xff]  ;;  %2272 = vmatprep.subr.mxu0 %v2333_v3 }
 0xf60   :  { %2273 = vmatpush3.msra.mxu0 %v1998_v45 }
 0xf61   :  { %2274 = vmatprep.subr.mxu0 %v2333_v3 }
 0xf62   :  { %2275 = vmatpush3.msra.mxu0 %v1997_v20 }
 0xf63   :  { %2276 = vmatprep.subr.mxu0 %v2333_v3 }
 0xf64   :  { %2277 = vmatpush3.msra.mxu0 %v1996_v47 }
 0xf65   :  { %2278 = vmatprep.subr.mxu0 %v2333_v3 }
 0xf66   :  { %2279 = vmatpush3.msra.mxu0 %v1995_v48 }
 0xfce   :  { %v1709_v49 = vpop.xlane.xlu0 %1708 }
 0xfcf   :  { %v1710_v53 = vmul.f32 0.03125, %v1709_v49 }
 0xfd0   :  { %v1714_v54 = vpop.xlane.xlu1 %1713 }
 0xfd1   :  { %v1717_v55 = vmul.f32 %v1710_v53, %v1710_v53  ;;  %v1715_v22 = vmul.f32 0.03125, %v1714_v54  ;;  %v1716_v25 = vsub.f32 %v1706_v36, %v1710_v53  ;;  %v1942_v36 = vsel %vm1941_vm5, %v2683_v43, %v1936_v10 }
 0xfd2   :  { %v1745_v26 = vpop.permute.xlu0 %1744 }
 0xfd3   :  { %v1718_v27 = vsub.f32 %v1715_v22, %v1717_v55  ;;  %2254 = vmatpush3.msra.mxu1 %v1745_v26 }
 0xfd4   :  { %v1743_v28 = vpop.permute.xlu1 %1742  ;;  %2255 = vmatprep.subr.mxu1 %v2333_v3 }
 0xfd5   :  { %v1719_v57 = vadd.f32 1e-05, %v1718_v27  ;;  %2256 = vmatpush3.msra.mxu1 %v1743_v28 }
 0xfd6   :  { %2257 = vmatprep.subr.mxu1 %v2333_v3  ;;  %v1741_v58 = vpop.permute.xlu0 %1740 }
 0xfd7   :  { %2329 = vrsqrt.f32 %v1719_v57  ;;  %2258 = vmatpush3.msra.mxu1 %v1741_v58 }
 0xfd8   :  { %v1739_v59 = vpop.permute.xlu1 %1738  ;;  %2259 = vmatprep.subr.mxu1 %v2333_v3 }
 0xfd9   :  { %2260 = vmatpush3.msra.mxu1 %v1739_v59 }
 0xfe4   :  { %v2330_v18 = vpop.eup %2329 }
 0xfe5   :  { %v1721_v60 = vmul.f32 %v2330_v18, %v1716_v25 }
 0xfe7   :  { %v1726_v31 = vmul.f32 %v1725_v39, %v1721_v60 }
 0xfe9   :  { %v1731_v61 = vadd.f32 %v1730_v19, %v1726_v31 }
 0xfeb   :  { %2262 = vmatmul.mubr.msk.f32.vlgmr.msra.gmra.mxu1 %vm60_vm0, %v1731_v61 }
0x10ab   :  { %v1819_v21 = vpop.f32.mrf.mxu1 }
0x10ac   :  { %v1820_v63 = vadd.f32 %v1993_v62, %v1819_v21 }
0x10ad   :  { %v2263_v0 = vpop.f32.mrf.mxu1 }
0x10ae   :  { %v1823_v1 = vmax.f32 %v1820_v63, 0.0 }
0x10b0   :  { %2281 = vmatmul.mubr.msk.f32.vlgmr.msra.gmra.mxu0 %vm650_vm4, %v1823_v1 }
0x1170   :  { %v1906_v5 = vpop.f32.mrf.mxu0 }
0x1171   :  { %v1907_v3 = vadd.f32 %v1906_v5, %v1836_v4 }
0x1172   :  { %v2282_v6 = vpop.f32.mrf.mxu0 }
0x1173   :  { %v1910_v24 = vadd.f32 %v1907_v3, %v1731_v61 }
0x1175   :  { %v1911_v41 = vsel %vm519_vm3, %v1910_v24, 0.0  ;;  %v1915_v51 = vmul.f32 %v1910_v24, %v1910_v24 }
0x1176   :  { %1912 = vadd.xlane.f32.xlu0 %v1911_v41 }
0x1177   :  { %v1916_v52 = vsel %vm519_vm3, %v1915_v51, 0.0 }
0x1178   :  { %1917 = vadd.xlane.f32.xlu1 %v1916_v52 }
0x11ff   :  { %v1913_v44 = vpop.xlane.xlu0 %1912 }
0x1200   :  { %v1914_v46 = vmul.f32 0.03125, %v1913_v44 }
0x1201   :  { %v1918_v7 = vpop.xlane.xlu1 %1917 }
0x1202   :  { %v1921_v8 = vmul.f32 %v1914_v46, %v1914_v46  ;;  %v1919_v9 = vmul.f32 0.03125, %v1918_v7  ;;  %v1920_v2 = vsub.f32 %v1910_v24, %v1914_v46 }
0x1204   :  { %v1922_v11 = vsub.f32 %v1919_v9, %v1921_v8 }
0x1206   :  { %v1923_v15 = vadd.f32 1e-05, %v1922_v11 }
0x1208   :  { %2331 = vrsqrt.f32 %v1923_v15 }
0x1215   :  { %v2332_v30 = vpop.eup %2331 }
0x1216   :  { %v1925_v17 = vmul.f32 %v2332_v30, %v1920_v2 }
0x1218   :  { %v1930_v34 = vmul.f32 %v1929_v29, %v1925_v17 }
0x121a   :  { %v1935_v12 = vadd.f32 %v1934_v33, %v1930_v34 }
0x121c   :  { %v1939_v35 = vrot.slane %v1935_v12, 4 }
0x121e   :  { %v1944_v37 = vsel %vm1943_vm6, %v1942_v36, %v1939_v35 }
0x121f   :  { %1946 = vst.msk [vmem:[%s2985_s9] sm:$0x3f] %vm1945_vm7, %v1944_v37 }

</bundles_post_ra>
